<compile_context>
chip_gen: v7x
topology: tpu7x:2x2x1
jax: 0.10.0
libtpu: 0.0.40
codegen_flags: <defaults>
</compile_context>

<pallas_src>
import functools

import jax
import jax.numpy as jnp
from jax.experimental import pallas as pl
from jax.experimental.pallas import tpu as pltpu


def _layernorm(t, gamma, beta, eps=1e-5):
    # LayerNorm over the last axis (head_dim), matching nn.LayerNorm defaults.
    mu = jnp.mean(t, axis=-1, keepdims=True)
    var = jnp.mean((t - mu) ** 2, axis=-1, keepdims=True)
    return (t - mu) * jax.lax.rsqrt(var + eps) * gamma + beta


def _cross_attn_kernel(x_ref, y_ref,
                       wq_ref, bq_ref,
                       wk_ref, bk_ref,
                       wv_ref, bv_ref,
                       gq_ref, betq_ref,
                       gk_ref, betk_ref,
                       wp_ref, bp_ref,
                       o_ref,
                       *, num_heads: int, head_dim: int):
    H, D = num_heads, head_dim
    scale = D ** -0.5

    x = x_ref[0]                                  # (TN, C)  native dtype
    y = y_ref[0]                                  # (M,  C)  native dtype
    mxu_dtype = x.dtype                           # bf16 when model is bf16

    # Projections. Weights are already (in, out) -> contract directly on the
    # MXU, accumulate in f32.
    q = jnp.dot(x, wq_ref[...], preferred_element_type=jnp.float32) + bq_ref[...]
    k = jnp.dot(y, wk_ref[...], preferred_element_type=jnp.float32) + bk_ref[...]
    v = jnp.dot(y, wv_ref[...], preferred_element_type=jnp.float32) + bv_ref[...]

    TN = q.shape[0]
    M = k.shape[0]

    # (seq, C) -> (H, seq, D): single relayout per tensor, heads batched.
    qh = q.reshape(TN, H, D).transpose(1, 0, 2)   # (H, TN, D) f32
    kh = k.reshape(M, H, D).transpose(1, 0, 2)    # (H, M,  D) f32
    vh = v.reshape(M, H, D).transpose(1, 0, 2)    # (H, M,  D) f32

    # qk LayerNorm over head_dim (kept in f32), scale applied after q-LN.
    qh = _layernorm(qh, gq_ref[...], betq_ref[...]) * scale
    kh = _layernorm(kh, gk_ref[...], betk_ref[...])

    # Attention: heads batched on the MXU, f32 accumulation.
    attn = jnp.einsum('hnd,hmd->hnm',
                      qh.astype(mxu_dtype), kh.astype(mxu_dtype),
                      preferred_element_type=jnp.float32)      # (H, TN, M)
    attn = attn - jnp.max(attn, axis=-1, keepdims=True)
    attn = jnp.exp(attn)
    denom = jnp.sum(attn, axis=-1, keepdims=True)
    attn = attn * pl.reciprocal(denom, approx=True)            # EUP reciprocal

    out_h = jnp.einsum('hnm,hmd->hnd',
                       attn.astype(mxu_dtype), vh.astype(mxu_dtype),
                       preferred_element_type=jnp.float32)     # (H, TN, D)

    out = out_h.transpose(1, 0, 2).reshape(TN, H * D)          # (TN, C)

    # Output projection (proj_drop has p=0.0 -> identity).
    out = jnp.dot(out.astype(mxu_dtype), wp_ref[...],
                  preferred_element_type=jnp.float32) + bp_ref[...]

    o_ref[0] = out.astype(o_ref.dtype)


def cross_attention_block(x, y, params, *, num_heads, q_tile=128):
    B, N, C = x.shape
    _, M, _ = y.shape
    H = num_heads
    D = C // H
    itemsize = jnp.dtype(x.dtype).itemsize

    # ---- one-time (trace-time) weight prep: transpose / split outside kernel
    wq_t = params["wq"].T                         # (C, C)   (in, out)
    wkv = params["wkv"]                           # (2C, C)
    wk_t = wkv[:C].T                              # (C, C)
    wv_t = wkv[C:].T                              # (C, C)
    wp_t = params["wp"].T                         # (C, C)

    bq2 = params["bq"].reshape(1, C)
    bk2 = params["bkv"][:C].reshape(1, C)
    bv2 = params["bkv"][C:].reshape(1, C)
    bp2 = params["bp"].reshape(1, C)
    gq2, betq2 = params["gq"].reshape(1, D), params["betq"].reshape(1, D)
    gk2, betk2 = params["gk"].reshape(1, D), params["betk"].reshape(1, D)

    # Query-sequence tiling (multiple of 8; full N when small).
    tn = N if N <= q_tile else q_tile
    n_tiles = pl.cdiv(N, tn)

    full = lambda arr: pl.BlockSpec(arr.shape, lambda b, n: (0,) * arr.ndim)

    kernel = functools.partial(_cross_attn_kernel, num_heads=H, head_dim=D)

    # Advisory cost estimate for the XLA scheduler.
    flops = int(2 * B * N * C * C            # q proj
                + 2 * B * M * C * (2 * C)    # k + v proj
                + 2 * B * N * C * C          # out proj
                + 4 * B * H * N * M * D)     # q@k^T and attn@v
    transcendentals = int(B * H * N * M + B * H * (N + M))
    bytes_accessed = int(itemsize * (x.size + y.size + B * N * C
                                     + 4 * C * C + 4 * C + 4 * D))

    # TODO(synk): if production C < 128, fold a sequence factor into the lane
    # dim in the wrapper so output stores are not lane-masked.
    return pl.pallas_call(
        kernel,
        out_shape=jax.ShapeDtypeStruct((B, N, C), x.dtype),
        grid_spec=pltpu.PrefetchScalarGridSpec(
            num_scalar_prefetch=0,
            grid=(B, n_tiles),
            in_specs=[
                pl.BlockSpec((1, tn, C), lambda b, n: (b, n, 0)),   # x tile
                pl.BlockSpec((1, M, C), lambda b, n: (b, 0, 0)),    # y (resident per batch)
                full(wq_t), full(bq2),
                full(wk_t), full(bk2),
                full(wv_t), full(bv2),
                full(gq2), full(betq2),
                full(gk2), full(betk2),
                full(wp_t), full(bp2),
            ],
            out_specs=pl.BlockSpec((1, tn, C), lambda b, n: (b, n, 0)),
        ),
        compiler_params=pltpu.CompilerParams(
            dimension_semantics=("parallel", "parallel"),
            vmem_limit_bytes=48 * 1024 * 1024),
        cost_estimate=pl.CostEstimate(flops=flops,
                                      transcendentals=transcendentals,
                                      bytes_accessed=bytes_accessed),
    )(x, y, wq_t, bq2, wk_t, bk2, wv_t, bv2,
      gq2, betq2, gk2, betk2, wp_t, bp2)


def _reference(x, y, params, *, num_heads):
    # Pure-JAX reference mirroring the PyTorch forward exactly.
    B, N, C = x.shape
    M = y.shape[1]
    D = C // num_heads
    scale = D ** -0.5

    q = x @ params["wq"].T + params["bq"]                       # (B, N, C)
    kv = y @ params["wkv"].T + params["bkv"]                    # (B, M, 2C)
    q = q.reshape(B, N, num_heads, D).transpose(0, 2, 1, 3)     # (B, H, N, D)
    kv = kv.reshape(B, M, 2, num_heads, D).transpose(2, 0, 3, 1, 4)
    k, v = kv[0], kv[1]                                         # (B, H, M, D)

    def ln(t, g, b):
        mu = t.mean(-1, keepdims=True)
        var = ((t - mu) ** 2).mean(-1, keepdims=True)
        return (t - mu) / jnp.sqrt(var + 1e-5) * g + b

    q = ln(q, params["gq"], params["betq"]) * scale
    k = ln(k, params["gk"], params["betk"])
    attn = jax.nn.softmax(q @ k.transpose(0, 1, 3, 2), axis=-1)  # (B, H, N, M)
    out = (attn @ v).transpose(0, 2, 1, 3).reshape(B, N, C)
    return out @ params["wp"].T + params["bp"]


if __name__ == "__main__":
    B, N, M = 2, 8, 16
    num_heads, head_dim = 4, 8
    C = num_heads * head_dim                     # dim = 32

    key = jax.random.PRNGKey(0)
    ks = jax.random.split(key, 12)

    params = {
        "wq":   jax.random.normal(ks[0], (C, C), jnp.float32) * 0.05,
        "bq":   jax.random.normal(ks[1], (C,), jnp.float32) * 0.01,
        "wkv":  jax.random.normal(ks[2], (2 * C, C), jnp.float32) * 0.05,
        "bkv":  jax.random.normal(ks[3], (2 * C,), jnp.float32) * 0.01,
        "gq":   1.0 + jax.random.normal(ks[4], (head_dim,), jnp.float32) * 0.02,
        "betq": jax.random.normal(ks[5], (head_dim,), jnp.float32) * 0.02,
        "gk":   1.0 + jax.random.normal(ks[6], (head_dim,), jnp.float32) * 0.02,
        "betk": jax.random.normal(ks[7], (head_dim,), jnp.float32) * 0.02,
        "wp":   jax.random.normal(ks[8], (C, C), jnp.float32) * 0.05,
        "bp":   jax.random.normal(ks[9], (C,), jnp.float32) * 0.01,
    }

    x = jax.random.normal(ks[10], (B, N, C), jnp.float32)
    y = jax.random.normal(ks[11], (B, M, C), jnp.float32)

    out = cross_attention_block(x, y, params, num_heads=num_heads)
    out = jax.block_until_ready(out)

    ref = _reference(x, y, params, num_heads=num_heads)
    assert out.shape == (B, N, C)
    # Tolerance accounts for the EUP approximate reciprocal in the softmax.
    assert jnp.allclose(out, ref, atol=2e-3, rtol=2e-3), (
        float(jnp.max(jnp.abs(out - ref))))

    print("KERNEL_OK")
</pallas_src>

<mosaic_0001>
module attributes {stable_mosaic.version = 11 : i64} {
  func.func @_cross_attn_kernel(%arg0: i32, %arg1: i32, %arg2: memref<1x8x32xf32, #tpu.memory_space<vmem>>, %arg3: memref<1x16x32xf32, #tpu.memory_space<vmem>>, %arg4: memref<32x32xf32, #tpu.memory_space<vmem>>, %arg5: memref<1x32xf32, #tpu.memory_space<vmem>>, %arg6: memref<32x32xf32, #tpu.memory_space<vmem>>, %arg7: memref<1x32xf32, #tpu.memory_space<vmem>>, %arg8: memref<32x32xf32, #tpu.memory_space<vmem>>, %arg9: memref<1x32xf32, #tpu.memory_space<vmem>>, %arg10: memref<1x8xf32, #tpu.memory_space<vmem>>, %arg11: memref<1x8xf32, #tpu.memory_space<vmem>>, %arg12: memref<1x8xf32, #tpu.memory_space<vmem>>, %arg13: memref<1x8xf32, #tpu.memory_space<vmem>>, %arg14: memref<32x32xf32, #tpu.memory_space<vmem>>, %arg15: memref<1x32xf32, #tpu.memory_space<vmem>>, %arg16: memref<1x8x32xf32, #tpu.memory_space<vmem>>) attributes {dimension_semantics = [#tpu.dimension_semantics<parallel>, #tpu.dimension_semantics<parallel>], iteration_bounds = array<i64: 2, 1>, scalar_prefetch = 0 : i64, scratch_operands = 0 : i64, tpu.core_type = #tpu.core_type<tc>, window_params = [{transform_indices = @transform_0, window_bounds = array<i64: 1, 8, 32>}, {transform_indices = @transform_1, window_bounds = array<i64: 1, 16, 32>}, {pipeline_mode = #tpu.pipeline_mode<synchronous>, transform_indices = @transform_2, window_bounds = array<i64: 32, 32>}, {pipeline_mode = #tpu.pipeline_mode<synchronous>, transform_indices = @transform_3, window_bounds = array<i64: 1, 32>}, {pipeline_mode = #tpu.pipeline_mode<synchronous>, transform_indices = @transform_4, window_bounds = array<i64: 32, 32>}, {pipeline_mode = #tpu.pipeline_mode<synchronous>, transform_indices = @transform_5, window_bounds = array<i64: 1, 32>}, {pipeline_mode = #tpu.pipeline_mode<synchronous>, transform_indices = @transform_6, window_bounds = array<i64: 32, 32>}, {pipeline_mode = #tpu.pipeline_mode<synchronous>, transform_indices = @transform_7, window_bounds = array<i64: 1, 32>}, {pipeline_mode = #tpu.pipeline_mode<synchronous>, transform_indices = @transform_8, window_bounds = array<i64: 1, 8>}, {pipeline_mode = #tpu.pipeline_mode<synchronous>, transform_indices = @transform_9, window_bounds = array<i64: 1, 8>}, {pipeline_mode = #tpu.pipeline_mode<synchronous>, transform_indices = @transform_10, window_bounds = array<i64: 1, 8>}, {pipeline_mode = #tpu.pipeline_mode<synchronous>, transform_indices = @transform_11, window_bounds = array<i64: 1, 8>}, {pipeline_mode = #tpu.pipeline_mode<synchronous>, transform_indices = @transform_12, window_bounds = array<i64: 32, 32>}, {pipeline_mode = #tpu.pipeline_mode<synchronous>, transform_indices = @transform_13, window_bounds = array<i64: 1, 32>}, {transform_indices = @transform_14, window_bounds = array<i64: 1, 8, 32>}]} {
    %c0 = arith.constant 0 : index
    %c0_0 = arith.constant 0 : index
    %c0_1 = arith.constant 0 : index
    %0 = vector.load %arg2[%c0, %c0_0, %c0_1] : memref<1x8x32xf32, #tpu.memory_space<vmem>>, vector<1x8x32xf32>
    %1 = vector.shape_cast %0 : vector<1x8x32xf32> to vector<8x32xf32>
    %c0_2 = arith.constant 0 : index
    %c0_3 = arith.constant 0 : index
    %c0_4 = arith.constant 0 : index
    %2 = vector.load %arg3[%c0_2, %c0_3, %c0_4] : memref<1x16x32xf32, #tpu.memory_space<vmem>>, vector<1x16x32xf32>
    %3 = vector.shape_cast %2 : vector<1x16x32xf32> to vector<16x32xf32>
    %c0_5 = arith.constant 0 : index
    %c0_6 = arith.constant 0 : index
    %4 = vector.load %arg4[%c0_5, %c0_6] : memref<32x32xf32, #tpu.memory_space<vmem>>, vector<32x32xf32>
    %cst = arith.constant dense<0.000000e+00> : vector<8x32xf32>
    %5 = tpu.matmul %1, %4, %cst {dimension_numbers = #tpu.dot_dimension_numbers<[1], [0], [0], [1], [0, 0, 1, 1], [], []>} : vector<8x32xf32>, vector<32x32xf32>, vector<8x32xf32> -> vector<8x32xf32>
    %c0_7 = arith.constant 0 : index
    %c0_8 = arith.constant 0 : index
    %6 = vector.load %arg5[%c0_7, %c0_8] : memref<1x32xf32, #tpu.memory_space<vmem>>, vector<1x32xf32>
    %7 = vector.broadcast %6 : vector<1x32xf32> to vector<8x32xf32>
    %8 = arith.addf %5, %7 : vector<8x32xf32>
    %c0_9 = arith.constant 0 : index
    %c0_10 = arith.constant 0 : index
    %9 = vector.load %arg6[%c0_9, %c0_10] : memref<32x32xf32, #tpu.memory_space<vmem>>, vector<32x32xf32>
    %cst_11 = arith.constant dense<0.000000e+00> : vector<16x32xf32>
    %10 = tpu.matmul %3, %9, %cst_11 {dimension_numbers = #tpu.dot_dimension_numbers<[1], [0], [0], [1], [0, 0, 1, 1], [], []>} : vector<16x32xf32>, vector<32x32xf32>, vector<16x32xf32> -> vector<16x32xf32>
    %c0_12 = arith.constant 0 : index
    %c0_13 = arith.constant 0 : index
    %11 = vector.load %arg7[%c0_12, %c0_13] : memref<1x32xf32, #tpu.memory_space<vmem>>, vector<1x32xf32>
    %12 = vector.broadcast %11 : vector<1x32xf32> to vector<16x32xf32>
    %13 = arith.addf %10, %12 : vector<16x32xf32>
    %c0_14 = arith.constant 0 : index
    %c0_15 = arith.constant 0 : index
    %14 = vector.load %arg8[%c0_14, %c0_15] : memref<32x32xf32, #tpu.memory_space<vmem>>, vector<32x32xf32>
    %cst_16 = arith.constant dense<0.000000e+00> : vector<16x32xf32>
    %15 = tpu.matmul %3, %14, %cst_16 {dimension_numbers = #tpu.dot_dimension_numbers<[1], [0], [0], [1], [0, 0, 1, 1], [], []>} : vector<16x32xf32>, vector<32x32xf32>, vector<16x32xf32> -> vector<16x32xf32>
    %c0_17 = arith.constant 0 : index
    %c0_18 = arith.constant 0 : index
    %16 = vector.load %arg9[%c0_17, %c0_18] : memref<1x32xf32, #tpu.memory_space<vmem>>, vector<1x32xf32>
    %17 = vector.broadcast %16 : vector<1x32xf32> to vector<16x32xf32>
    %18 = arith.addf %15, %17 : vector<16x32xf32>
    %19 = vector.shape_cast %8 : vector<8x32xf32> to vector<8x4x8xf32>
    %20 = tpu.transpose %19, [1, 0, 2] : vector<8x4x8xf32> -> vector<4x8x8xf32>
    %21 = vector.shape_cast %13 : vector<16x32xf32> to vector<16x4x8xf32>
    %22 = tpu.transpose %21, [1, 0, 2] : vector<16x4x8xf32> -> vector<4x16x8xf32>
    %23 = vector.shape_cast %18 : vector<16x32xf32> to vector<16x4x8xf32>
    %24 = tpu.transpose %23, [1, 0, 2] : vector<16x4x8xf32> -> vector<4x16x8xf32>
    %c0_19 = arith.constant 0 : index
    %c0_20 = arith.constant 0 : index
    %25 = vector.load %arg10[%c0_19, %c0_20] : memref<1x8xf32, #tpu.memory_space<vmem>>, vector<1x8xf32>
    %c0_21 = arith.constant 0 : index
    %c0_22 = arith.constant 0 : index
    %26 = vector.load %arg11[%c0_21, %c0_22] : memref<1x8xf32, #tpu.memory_space<vmem>>, vector<1x8xf32>
    %cst_23 = arith.constant dense<0.000000e+00> : vector<4x8xf32>
    %27 = vector.multi_reduction <add>, %20, %cst_23 [2] : vector<4x8x8xf32> to vector<4x8xf32>
    %28 = vector.shape_cast %27 : vector<4x8xf32> to vector<4x8x1xf32>
    %cst_24 = arith.constant 8.000000e+00 : f32
    %29 = vector.broadcast %cst_24 : f32 to vector<4x8x1xf32>
    %30 = arith.divf %28, %29 : vector<4x8x1xf32>
    %31 = vector.broadcast %30 : vector<4x8x1xf32> to vector<4x8x8xf32>
    %32 = arith.subf %20, %31 : vector<4x8x8xf32>
    %33 = arith.mulf %32, %32 : vector<4x8x8xf32>
    %cst_25 = arith.constant dense<0.000000e+00> : vector<4x8xf32>
    %34 = vector.multi_reduction <add>, %33, %cst_25 [2] : vector<4x8x8xf32> to vector<4x8xf32>
    %35 = vector.shape_cast %34 : vector<4x8xf32> to vector<4x8x1xf32>
    %cst_26 = arith.constant 8.000000e+00 : f32
    %36 = vector.broadcast %cst_26 : f32 to vector<4x8x1xf32>
    %37 = arith.divf %35, %36 : vector<4x8x1xf32>
    %38 = vector.broadcast %30 : vector<4x8x1xf32> to vector<4x8x8xf32>
    %39 = arith.subf %20, %38 : vector<4x8x8xf32>
    %cst_27 = arith.constant 9.99999974E-6 : f32
    %40 = vector.broadcast %cst_27 : f32 to vector<4x8x1xf32>
    %41 = arith.addf %37, %40 : vector<4x8x1xf32>
    %42 = math.rsqrt %41 : vector<4x8x1xf32>
    %43 = vector.broadcast %42 : vector<4x8x1xf32> to vector<4x8x8xf32>
    %44 = arith.mulf %39, %43 : vector<4x8x8xf32>
    %45 = vector.shape_cast %25 : vector<1x8xf32> to vector<1x1x8xf32>
    %46 = vector.broadcast %45 : vector<1x1x8xf32> to vector<4x8x8xf32>
    %47 = arith.mulf %44, %46 : vector<4x8x8xf32>
    %48 = vector.shape_cast %26 : vector<1x8xf32> to vector<1x1x8xf32>
    %49 = vector.broadcast %48 : vector<1x1x8xf32> to vector<4x8x8xf32>
    %50 = arith.addf %47, %49 : vector<4x8x8xf32>
    %cst_28 = arith.constant 0.353553385 : f32
    %51 = vector.broadcast %cst_28 : f32 to vector<4x8x8xf32>
    %52 = arith.mulf %50, %51 : vector<4x8x8xf32>
    %c0_29 = arith.constant 0 : index
    %c0_30 = arith.constant 0 : index
    %53 = vector.load %arg12[%c0_29, %c0_30] : memref<1x8xf32, #tpu.memory_space<vmem>>, vector<1x8xf32>
    %c0_31 = arith.constant 0 : index
    %c0_32 = arith.constant 0 : index
    %54 = vector.load %arg13[%c0_31, %c0_32] : memref<1x8xf32, #tpu.memory_space<vmem>>, vector<1x8xf32>
    %cst_33 = arith.constant dense<0.000000e+00> : vector<4x16xf32>
    %55 = vector.multi_reduction <add>, %22, %cst_33 [2] : vector<4x16x8xf32> to vector<4x16xf32>
    %56 = vector.shape_cast %55 : vector<4x16xf32> to vector<4x16x1xf32>
    %cst_34 = arith.constant 8.000000e+00 : f32
    %57 = vector.broadcast %cst_34 : f32 to vector<4x16x1xf32>
    %58 = arith.divf %56, %57 : vector<4x16x1xf32>
    %59 = vector.broadcast %58 : vector<4x16x1xf32> to vector<4x16x8xf32>
    %60 = arith.subf %22, %59 : vector<4x16x8xf32>
    %61 = arith.mulf %60, %60 : vector<4x16x8xf32>
    %cst_35 = arith.constant dense<0.000000e+00> : vector<4x16xf32>
    %62 = vector.multi_reduction <add>, %61, %cst_35 [2] : vector<4x16x8xf32> to vector<4x16xf32>
    %63 = vector.shape_cast %62 : vector<4x16xf32> to vector<4x16x1xf32>
    %cst_36 = arith.constant 8.000000e+00 : f32
    %64 = vector.broadcast %cst_36 : f32 to vector<4x16x1xf32>
    %65 = arith.divf %63, %64 : vector<4x16x1xf32>
    %66 = vector.broadcast %58 : vector<4x16x1xf32> to vector<4x16x8xf32>
    %67 = arith.subf %22, %66 : vector<4x16x8xf32>
    %cst_37 = arith.constant 9.99999974E-6 : f32
    %68 = vector.broadcast %cst_37 : f32 to vector<4x16x1xf32>
    %69 = arith.addf %65, %68 : vector<4x16x1xf32>
    %70 = math.rsqrt %69 : vector<4x16x1xf32>
    %71 = vector.broadcast %70 : vector<4x16x1xf32> to vector<4x16x8xf32>
    %72 = arith.mulf %67, %71 : vector<4x16x8xf32>
    %73 = vector.shape_cast %53 : vector<1x8xf32> to vector<1x1x8xf32>
    %74 = vector.broadcast %73 : vector<1x1x8xf32> to vector<4x16x8xf32>
    %75 = arith.mulf %72, %74 : vector<4x16x8xf32>
    %76 = vector.shape_cast %54 : vector<1x8xf32> to vector<1x1x8xf32>
    %77 = vector.broadcast %76 : vector<1x1x8xf32> to vector<4x16x8xf32>
    %78 = arith.addf %75, %77 : vector<4x16x8xf32>
    "tpu.trace_start"() <{level = 10 : i32, message = "hnd,hmd->hnm"}> : () -> ()
    %cst_38 = arith.constant dense<0.000000e+00> : vector<4x8x16xf32>
    %79 = tpu.matmul %52, %78, %cst_38 {dimension_numbers = #tpu.dot_dimension_numbers<[2], [2], [1], [1], [0, 0, 0, 1, 1, 1], [0], [0]>} : vector<4x8x8xf32>, vector<4x16x8xf32>, vector<4x8x16xf32> -> vector<4x8x16xf32>
    "tpu.trace_stop"() : () -> ()
    %cst_39 = arith.constant dense<0xFF800000> : vector<4x8xf32>
    %80 = vector.multi_reduction <maximumf>, %79, %cst_39 [2] : vector<4x8x16xf32> to vector<4x8xf32>
    %81 = vector.shape_cast %80 : vector<4x8xf32> to vector<4x8x1xf32>
    %82 = vector.broadcast %81 : vector<4x8x1xf32> to vector<4x8x16xf32>
    %83 = arith.subf %79, %82 : vector<4x8x16xf32>
    %84 = math.exp %83 : vector<4x8x16xf32>
    %cst_40 = arith.constant dense<0.000000e+00> : vector<4x8xf32>
    %85 = vector.multi_reduction <add>, %84, %cst_40 [2] : vector<4x8x16xf32> to vector<4x8xf32>
    %86 = vector.shape_cast %85 : vector<4x8xf32> to vector<4x8x1xf32>
    %87 = tpu.reciprocal %86 {approx = true} : vector<4x8x1xf32> -> vector<4x8x1xf32>
    %88 = vector.broadcast %87 : vector<4x8x1xf32> to vector<4x8x16xf32>
    %89 = arith.mulf %84, %88 : vector<4x8x16xf32>
    "tpu.trace_start"() <{level = 10 : i32, message = "hnm,hmd->hnd"}> : () -> ()
    %cst_41 = arith.constant dense<0.000000e+00> : vector<4x8x8xf32>
    %90 = tpu.matmul %89, %24, %cst_41 {dimension_numbers = #tpu.dot_dimension_numbers<[2], [1], [1], [2], [0, 0, 0, 1, 1, 2], [0], [0]>} : vector<4x8x16xf32>, vector<4x16x8xf32>, vector<4x8x8xf32> -> vector<4x8x8xf32>
    "tpu.trace_stop"() : () -> ()
    %91 = tpu.transpose %90, [1, 0, 2] : vector<4x8x8xf32> -> vector<8x4x8xf32>
    %92 = vector.shape_cast %91 : vector<8x4x8xf32> to vector<8x32xf32>
    %c0_42 = arith.constant 0 : index
    %c0_43 = arith.constant 0 : index
    %93 = vector.load %arg14[%c0_42, %c0_43] : memref<32x32xf32, #tpu.memory_space<vmem>>, vector<32x32xf32>
    %cst_44 = arith.constant dense<0.000000e+00> : vector<8x32xf32>
    %94 = tpu.matmul %92, %93, %cst_44 {dimension_numbers = #tpu.dot_dimension_numbers<[1], [0], [0], [1], [0, 0, 1, 1], [], []>} : vector<8x32xf32>, vector<32x32xf32>, vector<8x32xf32> -> vector<8x32xf32>
    %c0_45 = arith.constant 0 : index
    %c0_46 = arith.constant 0 : index
    %95 = vector.load %arg15[%c0_45, %c0_46] : memref<1x32xf32, #tpu.memory_space<vmem>>, vector<1x32xf32>
    %96 = vector.broadcast %95 : vector<1x32xf32> to vector<8x32xf32>
    %97 = arith.addf %94, %96 : vector<8x32xf32>
    %c0_47 = arith.constant 0 : index
    %c0_48 = arith.constant 0 : index
    %c0_49 = arith.constant 0 : index
    %98 = vector.load %arg16[%c0_47, %c0_48, %c0_49] : memref<1x8x32xf32, #tpu.memory_space<vmem>>, vector<1x8x32xf32>
    %99 = vector.shape_cast %98 : vector<1x8x32xf32> to vector<8x32xf32>
    %100 = vector.shape_cast %97 : vector<8x32xf32> to vector<1x8x32xf32>
    tpu.vector_store %arg16[%c0_47, %c0_48, %c0_49], %100 {strides = array<i32>} : memref<1x8x32xf32, #tpu.memory_space<vmem>>, vector<1x8x32xf32>,
    return
  }
  func.func @transform_0(%arg0: i32, %arg1: i32) -> (i32, i32, i32) {
    %c0_i32 = arith.constant 0 : i32
    %c0_i32_0 = arith.constant 0 : i32
    return %arg0, %arg1, %c0_i32 : i32, i32, i32
  }
  func.func @transform_1(%arg0: i32, %arg1: i32) -> (i32, i32, i32) {
    %c0_i32 = arith.constant 0 : i32
    %c0_i32_0 = arith.constant 0 : i32
    %c0_i32_1 = arith.constant 0 : i32
    return %arg0, %c0_i32, %c0_i32_0 : i32, i32, i32
  }
  func.func @transform_2(%arg0: i32, %arg1: i32) -> (i32, i32) {
    %c0_i32 = arith.constant 0 : i32
    %c0_i32_0 = arith.constant 0 : i32
    %c0_i32_1 = arith.constant 0 : i32
    return %c0_i32, %c0_i32_0 : i32, i32
  }
  func.func @transform_3(%arg0: i32, %arg1: i32) -> (i32, i32) {
    %c0_i32 = arith.constant 0 : i32
    %c0_i32_0 = arith.constant 0 : i32
    %c0_i32_1 = arith.constant 0 : i32
    return %c0_i32, %c0_i32_0 : i32, i32
  }
  func.func @transform_4(%arg0: i32, %arg1: i32) -> (i32, i32) {
    %c0_i32 = arith.constant 0 : i32
    %c0_i32_0 = arith.constant 0 : i32
    %c0_i32_1 = arith.constant 0 : i32
    return %c0_i32, %c0_i32_0 : i32, i32
  }
  func.func @transform_5(%arg0: i32, %arg1: i32) -> (i32, i32) {
    %c0_i32 = arith.constant 0 : i32
    %c0_i32_0 = arith.constant 0 : i32
    %c0_i32_1 = arith.constant 0 : i32
    return %c0_i32, %c0_i32_0 : i32, i32
  }
  func.func @transform_6(%arg0: i32, %arg1: i32) -> (i32, i32) {
    %c0_i32 = arith.constant 0 : i32
    %c0_i32_0 = arith.constant 0 : i32
    %c0_i32_1 = arith.constant 0 : i32
    return %c0_i32, %c0_i32_0 : i32, i32
  }
  func.func @transform_7(%arg0: i32, %arg1: i32) -> (i32, i32) {
    %c0_i32 = arith.constant 0 : i32
    %c0_i32_0 = arith.constant 0 : i32
    %c0_i32_1 = arith.constant 0 : i32
    return %c0_i32, %c0_i32_0 : i32, i32
  }
  func.func @transform_8(%arg0: i32, %arg1: i32) -> (i32, i32) {
    %c0_i32 = arith.constant 0 : i32
    %c0_i32_0 = arith.constant 0 : i32
    %c0_i32_1 = arith.constant 0 : i32
    return %c0_i32, %c0_i32_0 : i32, i32
  }
  func.func @transform_9(%arg0: i32, %arg1: i32) -> (i32, i32) {
    %c0_i32 = arith.constant 0 : i32
    %c0_i32_0 = arith.constant 0 : i32
    %c0_i32_1 = arith.constant 0 : i32
    return %c0_i32, %c0_i32_0 : i32, i32
  }
  func.func @transform_10(%arg0: i32, %arg1: i32) -> (i32, i32) {
    %c0_i32 = arith.constant 0 : i32
    %c0_i32_0 = arith.constant 0 : i32
    %c0_i32_1 = arith.constant 0 : i32
    return %c0_i32, %c0_i32_0 : i32, i32
  }
  func.func @transform_11(%arg0: i32, %arg1: i32) -> (i32, i32) {
    %c0_i32 = arith.constant 0 : i32
    %c0_i32_0 = arith.constant 0 : i32
    %c0_i32_1 = arith.constant 0 : i32
    return %c0_i32, %c0_i32_0 : i32, i32
  }
  func.func @transform_12(%arg0: i32, %arg1: i32) -> (i32, i32) {
    %c0_i32 = arith.constant 0 : i32
    %c0_i32_0 = arith.constant 0 : i32
    %c0_i32_1 = arith.constant 0 : i32
    return %c0_i32, %c0_i32_0 : i32, i32
  }
  func.func @transform_13(%arg0: i32, %arg1: i32) -> (i32, i32) {
    %c0_i32 = arith.constant 0 : i32
    %c0_i32_0 = arith.constant 0 : i32
    %c0_i32_1 = arith.constant 0 : i32
    return %c0_i32, %c0_i32_0 : i32, i32
  }
  func.func @transform_14(%arg0: i32, %arg1: i32) -> (i32, i32, i32) {
    %c0_i32 = arith.constant 0 : i32
    %c0_i32_0 = arith.constant 0 : i32
    return %arg0, %arg1, %c0_i32 : i32, i32, i32
  }
}

</mosaic_0001>

<bundles_post_ra>
// kernel: tpu_custom_call.1
= control target key start
LH: loop header
LB: loop body
LE: loop exit
PB: predicated region body
PF: predicated region fallthrough
CT: control target
= control target key end

     0   :  { %s4306_s0 = inlined_call_operand.hbm [shape: f32[2,8,32], index: 0, kind: input, shape index: {}]   ;;  %s4307_s1 = inlined_call_operand.hbm [shape: f32[2,16,32], index: 1, kind: input, shape index: {}]   ;;  %s4308_s2 = inlined_call_operand.hbm [shape: f32[32,32], index: 2, kind: input, shape index: {}]   ;;  %s4309_s3 = inlined_call_operand.vmem [shape: f32[1,32], index: 3, kind: input, shape index: {}]   ;;  %s4310_s4 = inlined_call_operand.hbm [shape: f32[32,32], index: 4, kind: input, shape index: {}]   ;;  %s4311_s5 = inlined_call_operand.vmem [shape: f32[1,32], index: 5, kind: input, shape index: {}]   ;;  %s4312_s6 = inlined_call_operand.hbm [shape: f32[32,32], index: 6, kind: input, shape index: {}]   ;;  %s4313_s7 = inlined_call_operand.vmem [shape: f32[1,32], index: 7, kind: input, shape index: {}]   ;;  %s4314_s8 = inlined_call_operand.vmem [shape: f32[1,8], index: 8, kind: input, shape index: {}]   ;;  %s4315_s9 = inlined_call_operand.vmem [shape: f32[1,8], index: 9, kind: input, shape index: {}]   ;;  %s4316_s10 = inlined_call_operand.vmem [shape: f32[1,8], index: 10, kind: input, shape index: {}]   ;;  %s4317_s11 = inlined_call_operand.vmem [shape: f32[1,8], index: 11, kind: input, shape index: {}]   ;;  %s4318_s12 = inlined_call_operand.vmem [shape: f32[32,32], index: 12, kind: input, shape index: {}]   ;;  %s4319_s13 = inlined_call_operand.vmem [shape: f32[1,32], index: 13, kind: input, shape index: {}]   ;;  %s4320_s14 = inlined_call_operand.hbm [shape: f32[2,8,32], index: 14, kind: output, shape index: {}]  }
   0x1   :  { %4330 = sst [smem:[#allocation20_spill]] %s4306_s0 }
   0x2   :  { %4331 = sst [smem:[#allocation21_spill]] %s4308_s2 }
   0x3   :  { %4332 = sst [smem:[#allocation22_spill]] %s4313_s7 }
   0x4   :  { %4333 = sst [smem:[#allocation23_spill]] %s4314_s8 }
   0x5   :  { %4334 = sst [smem:[#allocation24_spill]] %s4315_s9 }
   0x6   :  { %4335 = sst [smem:[#allocation25_spill]] %s4317_s11 }
   0x7   :  { %4336 = sst [smem:[#allocation26_spill]] %s4318_s12 }
   0x8   :  { %4337 = sst [smem:[#allocation27_spill]] %s4319_s13 }
   0x9   :  { %4338 = sst [smem:[#allocation28_spill]] %s4320_s14 }
   0xa   :  { %19 = vsyncpa [#allocation3], 0 }
   0xb   :  { %21 = vsyncpa [#allocation3 + $0x1], 0 }
   0xc   :  { %22 = vsyncpa [#allocation6], 0 }
   0xd   :  { %24 = vsyncpa [#allocation6 + $0x1], 0 }
   0xe   :  { %25 = vsyncpa [#allocation9], 0 }
   0xf   :  { %26 = vsyncpa [#allocation4], 0 }
  0x10   :  { %28 = vsyncpa [#allocation4 + $0x1], 0  ;;  %s3582_s29 = smov 0   ;;  %s3584_s30 = smov 0  }
  0x11   :  { %s3586_s15 = smov 0   ;;  %s3588_s16 = smov 0  }
  0x12   :  { %s3590_s17 = smov 0   ;;  %s3592_s18 = smov 0  }
  0x13 LB: > { %4339 = sst [smem:[#allocation17_spill]] %s3466_s29  ;;  %s3613_s19 = sadd.s32 4294967295, %s3486_s18   ;;  %s3486_s18 = sphi %s3592_s18, %s34_s18   ;;  %s3482_s17 = sphi %s3590_s17, %s4379_s17   ;;  %s3478_s16 = sphi %s3588_s16, %s4378_s16   ;;  %s3474_s15 = sphi %s3586_s15, %s4377_s15   ;;  %s3470_s30 = sphi %s3584_s30, %s4376_s30   ;;  %s3466_s29 = sphi %s3582_s29, %s4375_s29  }
  0x14   : > { %4340 = sst [smem:[#allocation18_spill]] %s3478_s16  ;;  %s2830_s20 = sadd.s32 4294967294, %s3486_s18  }
  0x15   : > { %p68_p0 = scmp.ne.s32.totalorder %s3470_s30, %s3466_s29  ;;  %p4325_p1 = scmp.eq.s32.totalorder %s3613_s19, 0 }
  0x16   : > { %p378_p3 = scmp.eq.s32.totalorder %s2830_s20, 1  ;;  %p2831_p5 = scmp.ge.s32.totalorder %s3486_s18, 1 }
  0x17   : > { %p3622_p4 = por %p4325_p1, %p68_p0  ;;  %p385_p7 = scmp.lt.s32.totalorder %s3486_s18, 3 }
  0x18   : > { %p3627_p6 = por %p378_p3, %p68_p0  ;;  %s3488_s24 = smov [#allocation7]  }
  0x19   : > { %s4341_s21 = scalar_select %p3622_p4, 1, 0 }
  0x1a   : > { %s4342_s22 = scalar_select %p3627_p6, 1, 0 }
  0x1b   : > { %p3632_p8 = pnand %p2831_p5, %p385_p7  ;;  %s397_s25 = sshll.u32 %s3488_s24, 4  ;;  %s3636_s25 = int_to_ptr.vmem [resolvable:$true] %s397_s25 }
  0x1c   : > { %4343 = sst [smem:[#allocation19_spill]] %s4342_s22  ;;  %s3489_s27 = smov [#allocation8]  }
  0x1d   : > { %s4344_s23 = scalar_select %p3632_p8, 1, 0 }
  0x1e   : > { %p3115_p9 = pneg %p3632_p8  ;;  %s413_s28 = sshll.u32 %s3489_s27, 4  ;;  %s3647_s28 = int_to_ptr.vmem [resolvable:$true] %s413_s28 }
  0x1f   : > { %s3490_s20 = smov [#allocation10]   ;;  %s4346_s2 = sld [smem:[#allocation21_spill]] }
  0x20   : > { %p3643_p11 = pnand %p3115_p9, %p4325_p1  ;;  %s3649_s22 = sshll.u32 %s3490_s20, 4  ;;  %s430_s22 = int_to_ptr.vmem [resolvable:$true] %s3649_s22 }
  0x22   : > { %p3659_p13 = pneg %p3643_p11 }
  0x25   : > { %s3248_s14 = scalar_lea.hbm %s4346_s2, 512 }
  0x26   : > { %p3249_p12 = scmp.ne.s32.totalorder %s4346_s2, %s3248_s14  ;;  %p3255_p5 = scmp.lt.u32.totalorder %s3248_s14, %s4346_s2 }
  0x28   : > { %p3251_p0 = pnand %p3659_p13, %p3249_p12 }
  0x2a   : > { %p3252_p3 = pneg %p3251_p0 }
  0x2c   : > { %p3257_p7 = pnand %p3255_p5, %p3252_p3 }
  0x2e   : > { %3260 = shalt.err (!%p3257_p7)
}
  0x2f   : > { %s3261_s13 = scalar_lea.vmem %s3636_s25, 512  ;;  %p3269_p2 = scmp.lt.s32.totalorder %s3636_s25, %s3636_s25 }
  0x30   : > { %p3262_p9 = scmp.ne.s32.totalorder %s3636_s25, %s3261_s13  ;;  %p3270_p6 = scmp.lt.s32.totalorder %s3261_s13, %s3261_s13 }
  0x32   : > { %p3264_p10 = pnand %p3262_p9, %p3659_p13  ;;  %p3271_p12 = por %p3270_p6, %p3269_p2 }
  0x34   : > { %p3265_p1 = pneg %p3264_p10 }
  0x36   : > { %p3272_p0 = pnand %p3271_p12, %p3265_p1 }
  0x38   : > { %3275 = shalt.err (!%p3272_p0)
}
  0x39   : > { %s4328_s29 = smov 128   ;;  %s4329_s14 = smov 8  }
  0x3a   : > { %3118 = dma.hbm_to_vmem [thread:$0]  (!%p3643_p11), %s4346_s2, 512, %s3636_s25, [#allocation6], %s4328_s29, %s4328_s29, %s4329_s14  }
  0x3b   : > { %s3276_s13 = scalar_lea.hbm %s4310_s4, 512 }
  0x3c   : > { %p3277_p1 = scmp.ne.s32.totalorder %s4310_s4, %s3276_s13  ;;  %p3283_p10 = scmp.lt.u32.totalorder %s3276_s13, %s4310_s4 }
  0x3e   : > { %p3279_p2 = pnand %p3277_p1, %p3659_p13 }
  0x40   : > { %p3280_p6 = pneg %p3279_p2 }
  0x42   : > { %p3285_p3 = pnand %p3283_p10, %p3280_p6 }
  0x44   : > { %3288 = shalt.err (!%p3285_p3)
}
  0x45   : > { %s3289_s25 = scalar_lea.vmem %s3647_s28, 512  ;;  %p3297_p12 = scmp.lt.s32.totalorder %s3647_s28, %s3647_s28 }
  0x46   : > { %p3290_p5 = scmp.ne.s32.totalorder %s3647_s28, %s3289_s25  ;;  %p3298_p0 = scmp.lt.s32.totalorder %s3289_s25, %s3289_s25 }
  0x48   : > { %p3292_p7 = pnand %p3290_p5, %p3659_p13  ;;  %p3299_p1 = por %p3298_p0, %p3297_p12 }
  0x4a   : > { %p3293_p9 = pneg %p3292_p7 }
  0x4c   : > { %p3300_p2 = pnand %p3299_p1, %p3293_p9 }
  0x4e   : > { %3303 = shalt.err (!%p3300_p2)
}
  0x4f   : > { %3121 = dma.hbm_to_vmem [thread:$0]  (!%p3643_p11), %s4310_s4, 512, %s3647_s28, [#allocation9], %s4328_s29, %s4328_s29, %s4329_s14  }
  0x50   : > { %s3304_s16 = scalar_lea.hbm %s4312_s6, 512 }
  0x51   : > { %p3305_p6 = scmp.ne.s32.totalorder %s4312_s6, %s3304_s16  ;;  %p3311_p5 = scmp.lt.u32.totalorder %s3304_s16, %s4312_s6 }
  0x53   : > { %p3307_p10 = pnand %p3305_p6, %p3659_p13 }
  0x55   : > { %p3308_p3 = pneg %p3307_p10 }
  0x57   : > { %p3313_p7 = pnand %p3311_p5, %p3308_p3 }
  0x59   : > { %3316 = shalt.err (!%p3313_p7)
}
  0x5a   : > { %s3317_s25 = scalar_lea.vmem %s430_s22, 512  ;;  %p3325_p1 = scmp.lt.s32.totalorder %s430_s22, %s430_s22 }
  0x5b   : > { %p3318_p9 = scmp.ne.s32.totalorder %s430_s22, %s3317_s25  ;;  %p3326_p2 = scmp.lt.s32.totalorder %s3317_s25, %s3317_s25 }
  0x5d   : > { %p3320_p12 = pnand %p3318_p9, %p3659_p13  ;;  %p3327_p4 = por %p3326_p2, %p3325_p1 }
  0x5f   : > { %p3321_p0 = pneg %p3320_p12 }
  0x61   : > { %p3328_p8 = pnand %p3327_p4, %p3321_p0 }
  0x63   : > { %3331 = shalt.err (!%p3328_p8)
}
  0x64   : > { %3124 = dma.hbm_to_vmem [thread:$0]  (!%p3643_p11), %s4312_s6, 512, %s430_s22, [#allocation9], %s4328_s29, %s4328_s29, %s4329_s14  }
  0x65   : > { %s55_s12 = sadd.s32 1, %s3474_s15  ;;  %s46_s26 = sadd.s32 1, %s3482_s17 }
  0x66   : > { %p62_p4 = scmp.ne.s32.totalorder %s3474_s15, %s3470_s30  ;;  %p48_p8 = scmp.ge.s32.totalorder %s46_s26, 2 }
  0x67   : > { %p63_p13 = scmp.eq.s32.totalorder %s3486_s18, 0  ;;  %p4348_p6 = scmp.eq.s32.totalorder %s3613_s19, 1 }
  0x68   : > { %p3139_p3 = scmp.lt.s32.totalorder %s3486_s18, 2  ;;  %s4381_s26 = smov (%p48_p8, %s46_s26), 0 }
  0x69   : > { %p3738_p10 = por %p4348_p6, %p62_p4  ;;  %p64_p5 = por %p63_p13, %p62_p4 }
  0x6a   : > { %s3746_s9 = sand.u32 1, %s3474_s15   ;;  %s50_s22 = ssub.s32 %s3482_s17, %s4381_s26 }
  0x6b   : > { %p53_p11 = scmp.eq.s32.totalorder %s50_s22, 0  ;;  %s2836_s11 = sshll.u32 %s3746_s9, 3 }
  0x6c   : > { %s2837_s16 = sshll.u32 %s3482_s17, 7  ;;  %s4350_s0 = sld [smem:[#allocation20_spill]] }
  0x6d   : > { %s3753_s24 = scalar_select %p53_p11, %s3474_s15, %s55_s12  }
  0x6e   : > { %s468_s25 = scalar_lea.vmem [#allocation2], %s2836_s11  ;;  %p3764_p7 = pnand %p3139_p3, %p64_p5 }
  0x6f   : > { %s476_s28 = sshll.u32 %s468_s25, 4  ;;  %s2838_s12 = sshll.u32 %s3746_s9, 4  ;;  %s3760_s28 = int_to_ptr.vmem [resolvable:$true] %s476_s28 }
  0x70   : > { %s465_s27 = scalar_lea.sflag [#allocation3], %s3746_s9  ;;  %p3334_p12 = pneg %p3764_p7 }
  0x72   : > { %s3758_s13 = scalar_lea.hbm %s4350_s0, %s2837_s16  ;;  %s3337_s25 = scalar_lea.hbm %s4350_s0, 256 }
  0x73   : > { %s3332_s16 = scalar_lea.hbm %s3758_s13, 128  ;;  %p3338_p2 = scmp.lt.u32.totalorder %s3758_s13, %s4350_s0 }
  0x74   : > { %p3333_p9 = scmp.ne.s32.totalorder %s3758_s13, %s3332_s16  ;;  %p3339_p4 = scmp.lt.u32.totalorder %s3337_s25, %s3332_s16 }
  0x75   : > { %p3341_p13 = scmp.lt.u32.totalorder %s3332_s16, %s3758_s13 }
  0x76   : > { %p3335_p0 = pnand %p3334_p12, %p3333_p9  ;;  %p3340_p8 = por %p3339_p4, %p3338_p2 }
  0x78   : > { %p3336_p1 = pneg %p3335_p0  ;;  %p3342_p6 = por %p3341_p13, %p3340_p8 }
  0x7a   : > { %p3343_p3 = pnand %p3342_p6, %p3336_p1 }
  0x7c   : > { %3346 = shalt.err (!%p3343_p3)
}
  0x7d   : > { %s3347_s22 = scalar_lea.vmem %s3760_s28, 128  ;;  %s3493_s11 = smov [#allocation2]  }
  0x7e   : > { %p3348_p5 = scmp.ne.s32.totalorder %s3760_s28, %s3347_s22  ;;  %s3352_s20 = sshll.u32 %s3493_s11, 4  ;;  %s3353_s20 = int_to_ptr.vmem [resolvable:$false] %s3352_s20 }
  0x7f   : > { %s3354_s29 = scalar_lea.vmem %s3353_s20, 256  ;;  %p3355_p0 = scmp.lt.s32.totalorder %s3760_s28, %s3353_s20 }
  0x80   : > { %p3350_p11 = pnand %p3348_p5, %p3334_p12  ;;  %p3356_p2 = scmp.lt.s32.totalorder %s3354_s29, %s3347_s22 }
  0x82   : > { %p3351_p9 = pneg %p3350_p11  ;;  %p3357_p4 = por %p3356_p2, %p3355_p0 }
  0x84   : > { %p3358_p8 = pnand %p3357_p4, %p3351_p9 }
  0x86   : > { %3361 = shalt.err (!%p3358_p8)
}
  0x87   : > { %3128 = dma.hbm_to_vmem [thread:$0]  (!%p3764_p7), %s3758_s13, 128, %s3760_s28, %s465_s27  }
  0x88   : > { %s487_s14 = scalar_lea.vmem [#allocation5], %s2838_s12  ;;  %s483_s25 = sand.u32 1, %s3486_s18  }
  0x89   : > { %s494_s16 = sshll.u32 %s487_s14, 4  ;;  %s4352_s11 = sshll.u32 %s3482_s17, 8  ;;  %s3799_s16 = int_to_ptr.vmem [resolvable:$true] %s494_s16 }
  0x8a   : > { %s3806_s29 = scalar_lea.hbm %s4307_s1, %s4352_s11  ;;  %s3808_s0 = scalar_lea.sflag [#allocation6], %s483_s25 }
  0x8b   : > { %s3362_s2 = scalar_lea.hbm %s3806_s29, 256  ;;  %s3367_s28 = scalar_lea.hbm %s4307_s1, 512 }
  0x8c   : > { %p3363_p1 = scmp.ne.s32.totalorder %s3806_s29, %s3362_s2  ;;  %p3368_p3 = scmp.lt.u32.totalorder %s3806_s29, %s4307_s1 }
  0x8d   : > { %p3369_p5 = scmp.lt.u32.totalorder %s3367_s28, %s3362_s2  ;;  %p3371_p9 = scmp.lt.u32.totalorder %s3362_s2, %s3806_s29 }
  0x8e   : > { %p3365_p13 = pnand %p3363_p1, %p3334_p12 }
  0x8f   : > { %p3370_p11 = por %p3369_p5, %p3368_p3 }
  0x90   : > { %p3366_p6 = pneg %p3365_p13 }
  0x91   : > { %p3372_p0 = por %p3371_p9, %p3370_p11 }
  0x93   : > { %p3373_p2 = pnand %p3372_p0, %p3366_p6 }
  0x95   : > { %3376 = shalt.err (!%p3373_p2)
}
  0x96   : > { %s3377_s14 = scalar_lea.vmem %s3799_s16, 256  ;;  %s3494_s25 = smov [#allocation5]  }
  0x97   : > { %p3378_p4 = scmp.ne.s32.totalorder %s3799_s16, %s3377_s14  ;;  %s3382_s11 = sshll.u32 %s3494_s25, 4  ;;  %s3383_s11 = int_to_ptr.vmem [resolvable:$false] %s3382_s11 }
  0x98   : > { %s3384_s22 = scalar_lea.vmem %s3383_s11, 512  ;;  %p3385_p13 = scmp.lt.s32.totalorder %s3799_s16, %s3383_s11 }
  0x99   : > { %p3380_p8 = pnand %p3378_p4, %p3334_p12  ;;  %p3386_p3 = scmp.lt.s32.totalorder %s3384_s22, %s3377_s14 }
  0x9b   : > { %p3381_p1 = pneg %p3380_p8  ;;  %p3387_p5 = por %p3386_p3, %p3385_p13 }
  0x9d   : > { %p3388_p11 = pnand %p3387_p5, %p3381_p1 }
  0x9f   : > { %3391 = shalt.err (!%p3388_p11)
}
  0xa0   : > { %s4353_s2 = smov 8   ;;  %s4354_s20 = smov 128  }
  0xa1   : > { %3131 = dma.hbm_to_vmem [thread:$0]  (!%p3764_p7), %s3806_s29, 256, %s3799_s16, %s3808_s0, %s4354_s20, %s4354_s20, %s4353_s2  }
  0xa2   : > { %p4355_p12 = scmp.ne.s32.totalorder %s4344_s23, 0 }
  0xa3   : > { %s3840_s9 = sand.u32 (!%p4355_p12), 1, %s3470_s30   ;;  %p4356_p6 = scmp.ne.s32.totalorder (!%p4355_p12), %s4341_s21, 0 }
  0xa4   : > { %506 = sbr.rel (%p4355_p12) target bundleno = 2004 (0x7d4), region = 76  ;;  %s2842_s13 = sshll.u32 (!%p4355_p12), %s3840_s9, 3 }
  0xa5   : > { %s509_s28 = scalar_lea.sflag (!%p4355_p12), [#allocation3], %s3840_s9  ;;  %s3846_s7 = scalar_lea.vmem (!%p4355_p12), [#allocation2], %s2842_s13 }
  0xab   : > { %3445 = dma.done.wait (%p4356_p6), %s509_s28, 128  }
  0xac   : > { %3447 = vsyncadd (%p4356_p6), %s509_s28, 4294967168  ;;  %s517_s0 = sand.u32 1, %s3613_s19   ;;  %s2843_s23 = sshll.u32 %s3840_s9, 4 }
  0xad   : > { %s518_s16 = scalar_lea.sflag [#allocation6], %s517_s0  ;;  %s3854_s29 = scalar_lea.vmem [#allocation5], %s2843_s23 }
  0xae   : > { %3449 = dma.done.wait (%p4356_p6), %s518_s16, 256  }
  0xaf   : > { %3451 = vsyncadd (%p4356_p6), %s518_s16, 4294967040  ;;  %p4357_p7 = scmp.eq.s32.totalorder %s3613_s19, 0 }
  0xb1   : > { %3453 = dma.done.wait (%p4357_p7), [#allocation6], 512   ;;  %p4358_p9 = pmov %p4357_p7 }
  0xb2   : > { %p4359_p0 = pmov %p4357_p7 }
  0xb3   : > { %3455 = vsyncadd (%p4358_p9), [#allocation6], 4294966784 }
  0xb4   : > { %3457 = dma.done.wait (%p4359_p0), [#allocation9], 1024   ;;  %p4360_p2 = pmov %p4359_p0 }
  0xb5   : > { %v3495_v0 = vmov 0.0|0.0   ;;  %vm3496_vm0 = vmmov 0   ;;  %v3497_v1 = vmov 0.0   ;;  %vm597_vm1 = vcmask 261120   ;;  %v671_v2 = vld [vmem:[#allocation8] sm:$0xff]  ;;  %v672_v3 = vld [vmem:[#allocation8 + $0x8] sm:$0xff] }
  0xb6   : > { %3459 = vsyncadd (%p4360_p2), [#allocation9], 4294966272  ;;  %3041 = vmatprep.subr.bf16.mxu0 %v3495_v0  ;;  %2949 = vmatprep.mubr.msk.f32.mxu0 %vm3496_vm0, %v3497_v1  ;;  %v673_v4 = vld [vmem:[#allocation8 + $0x10] sm:$0xff]  ;;  %v3047_v5 = vpack.c.bf16 %v672_v3, %v671_v2  ;;  %v674_v6 = vld [vmem:[#allocation8 + $0x18] sm:$0xff]  ;;  %s3498_s12 = smov 112   ;;  %s3499_s27 = smov 120   ;;  %v864_v28 = vlaneseq }
  0xb7   : > { %v584_v7 = vld [vmem:[%s3854_s29] sm:$0xff]  ;;  %v3051_v8 = vpack.c.bf16 %v674_v6, %v673_v4  ;;  %v587_v10 = vld [vmem:[#allocation7 + $0x8] sm:$0xff]  ;;  %v589_v13 = vld [vmem:[#allocation7 + $0x18] sm:$0xff]  ;;  %s3500_s11 = smov 104   ;;  %v3501_v26 = vmov 1983009808  }
  0xb8   : > { %2960 = vmatprep.mubr.msk.f32.mxu1 %vm597_vm1, %v584_v7  ;;  %v586_v9 = vld [vmem:[#allocation7] sm:$0xff]  ;;  %v588_v11 = vld [vmem:[#allocation7 + $0x10] sm:$0xff]  ;;  %3048 = vmatprep.subr.bf16.mxu1 %v3047_v5  ;;  %v3875_v15 = vld [vmem:[%s3854_s29 + $0x8] sm:$0xff]  ;;  %v862_v27 = vunpack.c.l.s4 %v3501_v26  ;;  %v865_v32 = vshrl.u32 %v864_v28, 7  ;;  %v3502_v33 = vmov 1934713408  }
  0xb9   : > { %v3042_v12 = vpack.c.bf16 %v587_v10, %v586_v9  ;;  %3050 = vmatpush3.bf16.msra.mxu1 %v3047_v5  ;;  %v3045_v14 = vpack.c.bf16 %v589_v13, %v588_v11  ;;  %v583_v16 = vld [vmem:[%s3846_s7] sm:$0xff]  ;;  %v894_v34 = vunpack.c.l.s4 %v3502_v33  ;;  %vm1581_vm2 = vcmask 64512   ;;  %s4361_s7 = sld [smem:[#allocation25_spill]]  ;;  %s4362_s16 = sld [smem:[#allocation23_spill]] }
  0xba   : > { %3052 = vmatprep.subr.bf16.mxu1 %v3051_v8  ;;  %v2850_v17 = vld [vmem:[%s4311_s5] ss:$0 sm:$0xff]  ;;  %v863_v31 = vunpack.c.0.s8 %v862_v27  ;;  %vm4081_vm3 = vmpackc.low %vm1581_vm2, %vm1581_vm2  ;;  %s4365_s21 = sld [smem:[#allocation24_spill]]  ;;  %vm2109_vm4 = vcmask 130048   ;;  %s4366_s22 = sld [smem:[#allocation22_spill]]  ;;  %vm2596_vm5 = vcmask 195584  }
  0xbb   : > { %3043 = vmatpush3.bf16.msra.mxu0 %v3042_v12  ;;  %v2848_v24 = vld [vmem:[%s4309_s3] ss:$0 sm:$0xff]  ;;  %v895_v40 = vunpack.c.0.s8 %v894_v34  ;;  %s3503_s29 = smov 16   ;;  %s3504_s19 = smov 8  }
  0xbc   : > { %3044 = vmatprep.subr.bf16.mxu0 %v3495_v0  ;;  %v3905_v37 = vsub.s32 %v863_v31, %v865_v32  ;;  %s2684_s23 = scalar_lea.sflag [#allocation4], %s3840_s9 }
  0xbd   : > { %3054 = vmatpush3.bf16.msra.mxu1 %v3051_v8  ;;  %v3909_v51 = vsub.s32 %v895_v40, %v865_v32 }
  0xbe   : > { %3063 = vmatprep.subr.bf16.mxu1 %v3495_v0 }
  0xbf   : > { %3046 = vmatpush3.bf16.msra.mxu0 %v3045_v14 }
  0xc0   : > { %2961 = vmatmul.mubr.msk.f32.vlgmr.msra.gmra.mrb[0].mxu1 %vm597_vm1, %v3875_v15 }
  0xc1   : > { %2978 = vmatprep.mubr.msk.f32.mxu1 %vm3496_vm0, %v3497_v1 }
  0xc2   : > { %2950 = vmatmul.mubr.msk.f32.vlgmr.msra.gmra.mrb[0].mxu0 %vm597_vm1, %v583_v16 }
  0xc3   : > { %2971 = vmatprep.mubr.msk.f32.mxu0 %vm597_vm1, %v584_v7 }
 0x193   : > { %v2962_v18 = vpop.f32.mrb[0].mxu1 }
 0x194   : > { %v760_v19 = vadd.f32 %v2962_v18, %v2850_v17  ;;  %v754_v20 = vpop.f32.mrb[1].mxu1 }
 0x195   : > { %v667_v21 = vpop.f32.mrb[0].mxu0  ;;  %v755_v23 = vadd.f32 %v2850_v17, %v754_v20 }
 0x196   : > { %v2951_v22 = vpop.f32.mrb[1].mxu0  ;;  %1005 = vrot.lane.b32.xlu1 %v760_v19, %s3498_s12  ;;  %999 = vrot.lane.b32.xlu0 %v760_v19, %s3499_s27  ;;  %v3897_v25 = vadd.f32 %v2848_v24, %v667_v21 }
 0x19a   : > { %1003 = vrot.lane.b32.xlu1 %v755_v23, %s3498_s12  ;;  %997 = vrot.lane.b32.xlu0 %v755_v23, %s3499_s27 }
 0x19e   : > { %1011 = vrot.lane.b32.xlu1 %v760_v19, %s3500_s11  ;;  %1009 = vrot.lane.b32.xlu0 %v755_v23, %s3500_s11 }
 0x1a2   : > { %853 = vrot.lane.b32.xlu1 %v3897_v25, %s3498_s12  ;;  %850 = vrot.lane.b32.xlu0 %v3897_v25, %s3499_s27 }
 0x1a6   : > { %856 = vrot.lane.b32.xlu0 %v3897_v25, %s3500_s11 }
 0x208   : > { %v1006_v29 = vpop.permute.xlu1 %1005  ;;  %v1000_v30 = vpop.permute.xlu0 %999 }
 0x209   : > { %v1083_v38 = vcombine.low %v760_v19, %v1006_v29  ;;  %v1084_v39 = vcombine.high %v760_v19, %v1006_v29 }
 0x20b   : > { %v1091_v49 = vrot.slane %v1083_v38, %v3905_v37  ;;  %v1098_v50 = vrot.slane %v1084_v39, %v3905_v37 }
 0x20c   : > { %v1004_v35 = vpop.permute.xlu1 %1003  ;;  %v998_v36 = vpop.permute.xlu0 %997 }
 0x20d   : > { %v1015_v41 = vcombine.low %v755_v23, %v1004_v35  ;;  %v1016_v42 = vcombine.high %v755_v23, %v1004_v35 }
 0x20f   : > { %v1023_v56 = vrot.slane %v1015_v41, %v3905_v37  ;;  %v1030_v57 = vrot.slane %v1016_v42, %v3905_v37 }
 0x210   : > { %v1012_v43 = vpop.permute.xlu1 %1011  ;;  %v1010_v44 = vpop.permute.xlu0 %1009 }
 0x211   : > { %v1099_v45 = vcombine.low %v1000_v30, %v1012_v43  ;;  %v1100_v46 = vcombine.high %v1000_v30, %v1012_v43  ;;  %v1031_v47 = vcombine.low %v998_v36, %v1010_v44  ;;  %v1032_v48 = vcombine.high %v998_v36, %v1010_v44 }
 0x213   : > { %v1107_v52 = vrot.slane %v1099_v45, %v3905_v37  ;;  %v1114_v53 = vrot.slane %v1100_v46, %v3905_v37  ;;  %v1039_v54 = vrot.slane %v1031_v47, %v3905_v37  ;;  %v1046_v55 = vrot.slane %v1032_v48, %v3905_v37 }
 0x214   : > { %v851_v58 = vpop.permute.xlu0 %850  ;;  %v854_v13 = vpop.permute.xlu1 %853 }
 0x215   : > { %v1115_v59 = vcombine.low %v1091_v49, %v1107_v52  ;;  %v1116_v60 = vcombine.high %v1091_v49, %v1107_v52  ;;  %v1131_v61 = vcombine.low %v1098_v50, %v1114_v53  ;;  %v1132_v62 = vcombine.high %v1098_v50, %v1114_v53 }
 0x216   : > { %v1047_v63 = vcombine.low %v1023_v56, %v1039_v54  ;;  %v1048_v2 = vcombine.high %v1023_v56, %v1039_v54  ;;  %v1063_v3 = vcombine.low %v1030_v57, %v1046_v55  ;;  %v1064_v4 = vcombine.high %v1030_v57, %v1046_v55 }
 0x217   : > { %v1123_v5 = vrot.slane %v1115_v59, %v3909_v51  ;;  %v1130_v6 = vrot.slane %v1116_v60, %v3909_v51  ;;  %v1139_v7 = vrot.slane %v1131_v61, %v3909_v51  ;;  %v1146_v8 = vrot.slane %v1132_v62, %v3909_v51 }
 0x218   : > { %v1055_v9 = vrot.slane %v1047_v63, %v3909_v51  ;;  %v1062_v10 = vrot.slane %v1048_v2, %v3909_v51  ;;  %v1071_v11 = vrot.slane %v1063_v3, %v3909_v51  ;;  %v1078_v12 = vrot.slane %v1064_v4, %v3909_v51  ;;  %v857_v14 = vpop.permute.xlu0 %856 }
 0x219   : > { %v1219_v16 = vcombine.low %v1123_v5, %v1130_v6  ;;  %v2860_v17 = vcombine.high %v1123_v5, %v1130_v6  ;;  %v1235_v18 = vcombine.low %v1139_v7, %v1146_v8  ;;  %v2861_v19 = vcombine.high %v1139_v7, %v1146_v8 }
 0x21a   : > { %v1151_v20 = vcombine.low %v1055_v9, %v1062_v10  ;;  %v2858_v21 = vcombine.high %v1055_v9, %v1062_v10  ;;  %v1167_v22 = vcombine.low %v1071_v11, %v1078_v12  ;;  %v2859_v23 = vcombine.high %v1071_v11, %v1078_v12 }
 0x21b   : > { %v859_v24 = vcombine.low %v3897_v25, %v854_v13  ;;  %v860_v26 = vcombine.high %v3897_v25, %v854_v13  ;;  %v875_v27 = vcombine.low %v851_v58, %v857_v14  ;;  %v876_v28 = vcombine.high %v851_v58, %v857_v14 }
 0x21c   : > { %v1226_v29 = vrot.slane %v1219_v16, %v3905_v37  ;;  %v1234_v30 = vrot.slane %v2860_v17, %v3905_v37  ;;  %v1242_v31 = vrot.slane %v1235_v18, %v3905_v37  ;;  %v1250_v32 = vrot.slane %v2861_v19, %v3905_v37 }
 0x21d   : > { %v867_v33 = vrot.slane %v859_v24, %v3905_v37  ;;  %v874_v34 = vrot.slane %v860_v26, %v3905_v37  ;;  %v883_v35 = vrot.slane %v875_v27, %v3905_v37  ;;  %v890_v36 = vrot.slane %v876_v28, %v3905_v37 }
 0x21e   : > { %v1251_v38 = vcombine.low %v1226_v29, %v1234_v30  ;;  %v1267_v25 = vcombine.low %v1242_v31, %v1250_v32  ;;  %v1158_v39 = vrot.slane %v1151_v20, %v3905_v37  ;;  %v1166_v40 = vrot.slane %v2858_v21, %v3905_v37 }
 0x21f   : > { %v891_v41 = vcombine.low %v867_v33, %v883_v35  ;;  %v892_v42 = vcombine.high %v867_v33, %v883_v35  ;;  %v907_v43 = vcombine.low %v874_v34, %v890_v36  ;;  %v908_v44 = vcombine.high %v874_v34, %v890_v36 }
 0x220   : > { %v1259_v45 = vrot.slane %v1251_v38, %v3909_v51  ;;  %v1275_v46 = vrot.slane %v1267_v25, %v3909_v51  ;;  %v1174_v47 = vrot.slane %v1167_v22, %v3905_v37  ;;  %v1182_v48 = vrot.slane %v2859_v23, %v3905_v37 }
 0x221   : > { %v899_v49 = vrot.slane %v891_v41, %v3909_v51  ;;  %v906_v50 = vrot.slane %v892_v42, %v3909_v51  ;;  %v915_v52 = vrot.slane %v907_v43, %v3909_v51  ;;  %v922_v53 = vrot.slane %v908_v44, %v3909_v51 }
 0x222   : > { %v3945_v54 = vcombine.high %v1259_v45, %v1275_v46  ;;  %v1183_v55 = vcombine.low %v1158_v39, %v1166_v40  ;;  %v1199_v56 = vcombine.low %v1174_v47, %v1182_v48  ;;  %v1184_v57 = vcombine.high %v1158_v39, %v1166_v40 }
 0x223   : > { %v927_v58 = vcombine.low %v899_v49, %v906_v50  ;;  %v2856_v59 = vcombine.high %v899_v49, %v906_v50  ;;  %v943_v60 = vcombine.low %v915_v52, %v922_v53  ;;  %v2857_v61 = vcombine.high %v915_v52, %v922_v53 }
 0x224   : > { %v1670_v62 = vsel %vm1581_vm2, %v3945_v54, 0.0  ;;  %v1191_v63 = vrot.slane %v1183_v55, %v3909_v51  ;;  %v1207_v2 = vrot.slane %v1199_v56, %v3909_v51  ;;  %v1200_v8 = vcombine.high %v1174_v47, %v1182_v48 }
 0x225   : > { %1671 = vadd.xlane.f32.xlu1 %v1670_v62  ;;  %v934_v3 = vrot.slane %v927_v58, %v3905_v37  ;;  %v942_v4 = vrot.slane %v2856_v59, %v3905_v37  ;;  %v950_v5 = vrot.slane %v943_v60, %v3905_v37  ;;  %v958_v6 = vrot.slane %v2857_v61, %v3905_v37 }
 0x226   : > { %v1215_v7 = vcombine.low %v1191_v63, %v1207_v2  ;;  %v1198_v11 = vrot.slane %v1184_v57, %v3909_v51  ;;  %v1214_v13 = vrot.slane %v1200_v8, %v3909_v51  ;;  %v1252_v14 = vcombine.high %v1226_v29, %v1234_v30 }
 0x227   : > { %v959_v9 = vcombine.low %v934_v3, %v942_v4  ;;  %v975_v10 = vcombine.low %v950_v5, %v958_v6  ;;  %v1268_v16 = vcombine.high %v1242_v31, %v1250_v32  ;;  %v1283_v22 = vcombine.low %v1259_v45, %v1275_v46 }
 0x228   : > { %v1661_v12 = vsel %vm1581_vm2, %v1215_v7, 0.0  ;;  %v3960_v21 = vcombine.low %v1198_v11, %v1214_v13  ;;  %v1266_v23 = vrot.slane %v1252_v14, %v3909_v51  ;;  %v960_v28 = vcombine.high %v934_v3, %v942_v4 }
 0x229   : > { %1662 = vadd.xlane.f32.xlu1 %v1661_v12  ;;  %v967_v17 = vrot.slane %v959_v9, %v3909_v51  ;;  %v983_v18 = vrot.slane %v975_v10, %v3909_v51  ;;  %v1282_v24 = vrot.slane %v1268_v16, %v3909_v51  ;;  %v976_v29 = vcombine.high %v950_v5, %v958_v6 }
 0x22a   : > { %v1664_v30 = vsel %vm1581_vm2, %v1283_v22, 0.0  ;;  %v1216_v31 = vcombine.high %v1191_v63, %v1207_v2  ;;  %v1673_v32 = vsel %vm1581_vm2, %v3960_v21, 0.0  ;;  %v974_v34 = vrot.slane %v960_v28, %v3909_v51 }
 0x22b   : > { %v992_v19 = vcombine.high %v967_v17, %v983_v18  ;;  %v991_v20 = vcombine.low %v967_v17, %v983_v18  ;;  %v3969_v33 = vcombine.high %v1266_v23, %v1282_v24  ;;  %v990_v35 = vrot.slane %v976_v29, %v3909_v51 }
 0x22c   : > { %v1667_v38 = vsel %vm1581_vm2, %v1216_v31, 0.0  ;;  %v1285_v39 = vcombine.low %v1266_v23, %v1282_v24  ;;  %v1218_v42 = vcombine.high %v1198_v11, %v1214_v13 }
 0x22d   : > { %v1585_v26 = vsel %vm1581_vm2, %v992_v19, 0.0  ;;  %v1582_v27 = vsel %vm1581_vm2, %v991_v20, 0.0  ;;  %v1682_v36 = vsel %vm1581_vm2, %v3969_v33, 0.0  ;;  %v3976_v25 = vcombine.high %v974_v34, %v990_v35 }
 0x22e   : > { %1586 = vadd.xlane.f32.xlu1 %v1585_v26  ;;  %1583 = vadd.xlane.f32.xlu0 %v1582_v27  ;;  %v1676_v41 = vsel %vm1581_vm2, %v1285_v39, 0.0  ;;  %v1679_v43 = vsel %vm1581_vm2, %v1218_v42, 0.0  ;;  %v3982_v44 = vcombine.low %v974_v34, %v990_v35 }
 0x22f   : > { %v1591_v40 = vsel %vm1581_vm2, %v3976_v25, 0.0 }
 0x230   : > { %v1588_v45 = vsel %vm1581_vm2, %v3982_v44, 0.0 }
 0x232   : > { %1674 = vadd.xlane.f32.xlu1 %v1673_v32  ;;  %1665 = vadd.xlane.f32.xlu0 %v1664_v30 }
 0x236   : > { %1683 = vadd.xlane.f32.xlu1 %v1682_v36  ;;  %1668 = vadd.xlane.f32.xlu0 %v1667_v38 }
 0x23a   : > { %1592 = vadd.xlane.f32.xlu1 %v1591_v40  ;;  %1677 = vadd.xlane.f32.xlu0 %v1676_v41 }
 0x23e   : > { %1680 = vadd.xlane.f32.xlu0 %v1679_v43 }
 0x242   : > { %1589 = vadd.xlane.f32.xlu0 %v1588_v45 }
 0x2b2   : > { %v1672_v46 = vpop.xlane.xlu1 %1671 }
 0x2b3   : > { %v1688_v53 = vmul.f32 0.125, %v1672_v46 }
 0x2b5   : > { %v3993_v62 = vsub.f32 %v3945_v54, %v1688_v53 }
 0x2b6   : > { %v1663_v47 = vpop.xlane.xlu1 %1662 }
 0x2b7   : > { %v1685_v48 = vmul.f32 0.125, %v1663_v47  ;;  %v1704_v12 = vmul.f32 %v3993_v62, %v3993_v62  ;;  %v763_v47 = vld [vmem:[#allocation10] sm:$0xff] }
 0x2b9   : > { %v3986_v55 = vsub.f32 %v1215_v7, %v1685_v48  ;;  %v764_v48 = vld [vmem:[#allocation10 + $0x8] sm:$0xff] }
 0x2bb   : > { %v1587_v49 = vpop.xlane.xlu1 %1586  ;;  %v1584_v50 = vpop.xlane.xlu0 %1583  ;;  %v1701_v3 = vmul.f32 %v3986_v55, %v3986_v55 }
 0x2bc   : > { %v1595_v52 = vmul.f32 0.125, %v1584_v50  ;;  %v1596_v61 = vmul.f32 0.125, %v1587_v49  ;;  %v3055_v49 = vpack.c.bf16 %v764_v48, %v763_v47  ;;  %v765_v50 = vld [vmem:[#allocation10 + $0x10] sm:$0xff] }
 0x2bd   : > { %v1709_v54 = vsel %vm1581_vm2, %v1701_v3, 0.0 }
 0x2be   : > { %v3988_v56 = vsub.f32 %v991_v20, %v1595_v52  ;;  %v4002_v7 = vsub.f32 %v992_v19, %v1596_v61  ;;  %3056 = vmatprep.subr.bf16.mxu0 %v3055_v49  ;;  %v766_v52 = vld [vmem:[#allocation10 + $0x18] sm:$0xff] }
 0x2bf   : > { %v1675_v57 = vpop.xlane.xlu1 %1674  ;;  %v1666_v58 = vpop.xlane.xlu0 %1665  ;;  %3058 = vmatpush3.bf16.msra.mxu0 %v3055_v49  ;;  %v3059_v53 = vpack.c.bf16 %v766_v52, %v765_v50 }
 0x2c0   : > { %v1686_v59 = vmul.f32 0.125, %v1666_v58  ;;  %v1603_v60 = vmul.f32 %v3988_v56, %v3988_v56  ;;  %v1689_v8 = vmul.f32 0.125, %v1675_v57  ;;  %v1604_v18 = vmul.f32 %v4002_v7, %v4002_v7 }
 0x2c1   : > { %3060 = vmatprep.subr.bf16.mxu0 %v3059_v53 }
 0x2c2   : > { %v3995_v63 = vsub.f32 %v1283_v22, %v1686_v59  ;;  %v1607_v2 = vsel %vm1581_vm2, %v1603_v60, 0.0  ;;  %v4013_v17 = vsub.f32 %v3960_v21, %v1689_v8  ;;  %v1718_v22 = vsel %vm1581_vm2, %v1704_v12, 0.0 }
 0x2c3   : > { %1608 = vadd.xlane.f32.xlu0 %v1607_v2  ;;  %v1669_v4 = vpop.xlane.xlu0 %1668  ;;  %v1684_v9 = vpop.xlane.xlu1 %1683  ;;  %v1610_v21 = vsel %vm1581_vm2, %v1604_v18, 0.0  ;;  %3062 = vmatpush3.bf16.msra.mxu0 %v3059_v53 }
 0x2c4   : > { %v1687_v5 = vmul.f32 0.125, %v1669_v4  ;;  %v1702_v6 = vmul.f32 %v3995_v63, %v3995_v63  ;;  %v1692_v19 = vmul.f32 0.125, %v1684_v9  ;;  %v1705_v29 = vmul.f32 %v4013_v17, %v4013_v17  ;;  %3067 = vmatprep.subr.bf16.mxu0 %v3495_v0 }
 0x2c6   : > { %v4004_v10 = vsub.f32 %v1216_v31, %v1687_v5  ;;  %v1712_v11 = vsel %vm1581_vm2, %v1702_v6, 0.0  ;;  %v4027_v30 = vsub.f32 %v3969_v33, %v1692_v19  ;;  %2972 = vmatmul.mubr.msk.f32.vlgmr.msra.gmra.mrb[2].mxu0 %vm597_vm1, %v3875_v15 }
 0x2c7   : > { %1710 = vadd.xlane.f32.xlu0 %v1709_v54  ;;  %1713 = vadd.xlane.f32.xlu1 %v1712_v11  ;;  %v1678_v13 = vpop.xlane.xlu0 %1677  ;;  %v1593_v24 = vpop.xlane.xlu1 %1592 }
 0x2c8   : > { %v1690_v14 = vmul.f32 0.125, %v1678_v13  ;;  %v1703_v16 = vmul.f32 %v4004_v10, %v4004_v10  ;;  %v1598_v31 = vmul.f32 0.125, %v1593_v24  ;;  %2985 = vmatprep.mubr.msk.f32.mxu0 %vm3496_vm0, %v3497_v1 }
 0x2ca   : > { %v4017_v20 = vsub.f32 %v1285_v39, %v1690_v14  ;;  %v1715_v23 = vsel %vm1581_vm2, %v1703_v16, 0.0  ;;  %v1721_v39 = vsel %vm1581_vm2, %v1705_v29, 0.0  ;;  %v4036_v40 = vsub.f32 %v3976_v25, %v1598_v31 }
 0x2cb   : > { %1719 = vadd.xlane.f32.xlu1 %v1718_v22  ;;  %1716 = vadd.xlane.f32.xlu0 %v1715_v23  ;;  %v1681_v26 = vpop.xlane.xlu0 %1680 }
 0x2cc   : > { %v1691_v27 = vmul.f32 0.125, %v1681_v26  ;;  %v1706_v28 = vmul.f32 %v4017_v20, %v4017_v20  ;;  %v1606_v25 = vmul.f32 %v4036_v40, %v4036_v40 }
 0x2ce   : > { %v4029_v32 = vsub.f32 %v1218_v42, %v1691_v27  ;;  %v1724_v34 = vsel %vm1581_vm2, %v1706_v28, 0.0  ;;  %v1708_v42 = vmul.f32 %v4027_v30, %v4027_v30 }
 0x2cf   : > { %1611 = vadd.xlane.f32.xlu1 %v1610_v21  ;;  %1725 = vadd.xlane.f32.xlu0 %v1724_v34  ;;  %v1590_v35 = vpop.xlane.xlu0 %1589  ;;  %v4059_v21 = vld [vmem:[%s4316_s10] ss:$0 sm:$0xff] }
 0x2d0   : > { %v1597_v36 = vmul.f32 0.125, %v1590_v35  ;;  %v1707_v38 = vmul.f32 %v4029_v32, %v4029_v32  ;;  %v1730_v45 = vsel %vm1581_vm2, %v1708_v42, 0.0 }
 0x2d2   : > { %v4039_v33 = vsub.f32 %v3982_v44, %v1597_v36  ;;  %v1727_v41 = vsel %vm1581_vm2, %v1707_v38, 0.0  ;;  %v1616_v44 = vsel %vm1581_vm2, %v1606_v25, 0.0 }
 0x2d3   : > { %1722 = vadd.xlane.f32.xlu1 %v1721_v39  ;;  %1728 = vadd.xlane.f32.xlu0 %v1727_v41 }
 0x2d4   : > { %v1605_v43 = vmul.f32 %v4039_v33, %v4039_v33 }
 0x2d6   : > { %v1613_v46 = vsel %vm1581_vm2, %v1605_v43, 0.0  ;;  %v4066_v43 = vld [vmem:[%s4361_s7] ss:$0 sm:$0xff]  ;;  %s4370_s7 = sld [smem:[#allocation28_spill]] }
 0x2d7   : > { %1731 = vadd.xlane.f32.xlu1 %v1730_v45  ;;  %1614 = vadd.xlane.f32.xlu0 %v1613_v46 }
 0x2db   : > { %1617 = vadd.xlane.f32.xlu1 %v1616_v44 }
 0x350   : > { %v1609_v57 = vpop.xlane.xlu0 %1608 }
 0x351   : > { %v1619_v58 = vmul.f32 0.125, %v1609_v57 }
 0x353   : > { %v1623_v59 = vadd.f32 1e-05, %v1619_v58 }
 0x354   : > { %v1714_v60 = vpop.xlane.xlu1 %1713  ;;  %v1711_v61 = vpop.xlane.xlu0 %1710 }
 0x355   : > { %v1734_v2 = vmul.f32 0.125, %v1714_v60  ;;  %v1733_v3 = vmul.f32 0.125, %v1711_v61  ;;  %3208 = vrsqrt.f32 %v1623_v59 }
 0x357   : > { %v1742_v4 = vadd.f32 1e-05, %v1734_v2  ;;  %v1741_v5 = vadd.f32 1e-05, %v1733_v3 }
 0x358   : > { %v1720_v6 = vpop.xlane.xlu1 %1719  ;;  %v1717_v8 = vpop.xlane.xlu0 %1716 }
 0x359   : > { %3210 = vrsqrt.f32 %v1742_v4  ;;  %v1736_v9 = vmul.f32 0.125, %v1720_v6  ;;  %v1735_v54 = vmul.f32 0.125, %v1717_v8 }
 0x35a   : > { %3212 = vrsqrt.f32 %v1741_v5 }
 0x35b   : > { %v1744_v15 = vadd.f32 1e-05, %v1736_v9  ;;  %v1743_v11 = vadd.f32 1e-05, %v1735_v54 }
 0x35c   : > { %v1612_v12 = vpop.xlane.xlu1 %1611  ;;  %v1726_v13 = vpop.xlane.xlu0 %1725 }
 0x35d   : > { %3214 = vrsqrt.f32 %v1744_v15  ;;  %v1620_v14 = vmul.f32 0.125, %v1612_v12  ;;  %v1738_v16 = vmul.f32 0.125, %v1726_v13 }
 0x35e   : > { %3216 = vrsqrt.f32 %v1743_v11 }
 0x35f   : > { %v1624_v18 = vadd.f32 1e-05, %v1620_v14  ;;  %v1746_v19 = vadd.f32 1e-05, %v1738_v16  ;;  %v3209_v27 = vpop.eup %3208 }
 0x360   : > { %v1723_v22 = vpop.xlane.xlu1 %1722  ;;  %v1729_v23 = vpop.xlane.xlu0 %1728  ;;  %v1631_v45 = vmul.f32 %v3209_v27, %v3988_v56 }
 0x361   : > { %3218 = vrsqrt.f32 %v1624_v18  ;;  %v1737_v24 = vmul.f32 0.125, %v1723_v22  ;;  %v1739_v26 = vmul.f32 0.125, %v1729_v23 }
 0x362   : > { %3220 = vrsqrt.f32 %v1746_v19 }
 0x363   : > { %v3211_v28 = vpop.eup %3210  ;;  %v1745_v29 = vadd.f32 1e-05, %v1737_v24  ;;  %v1747_v31 = vadd.f32 1e-05, %v1739_v26 }
 0x364   : > { %v3213_v34 = vpop.eup %3212  ;;  %v1758_v35 = vmul.f32 %v3211_v28, %v3995_v63  ;;  %v1732_v36 = vpop.xlane.xlu1 %1731 }
 0x365   : > { %v1615_v38 = vpop.xlane.xlu0 %1614  ;;  %v1757_v39 = vmul.f32 %v3213_v34, %v3986_v55  ;;  %3222 = vrsqrt.f32 %v1745_v29  ;;  %v1740_v41 = vmul.f32 0.125, %v1732_v36  ;;  %v2866_v55 = vld [vmem:[%s4362_s16] ss:$0 sm:$0xff]  ;;  %s4368_s16 = sld [smem:[#allocation18_spill]] }
 0x366   : > { %v1621_v42 = vmul.f32 0.125, %v1615_v38  ;;  %v1772_v46 = vmul.f32 %v4059_v21, %v1758_v35  ;;  %3224 = vrsqrt.f32 %v1747_v31  ;;  %v1641_v60 = vmul.f32 %v2866_v55, %v1631_v45 }
 0x367   : > { %v3215_v25 = vpop.eup %3214  ;;  %v1771_v63 = vmul.f32 %v4059_v21, %v1757_v39  ;;  %v1748_v44 = vadd.f32 1e-05, %v1740_v41 }
 0x368   : > { %v1625_v47 = vadd.f32 1e-05, %v1621_v42  ;;  %v3217_v48 = vpop.eup %3216  ;;  %v1760_v49 = vmul.f32 %v3215_v25, %v3993_v62  ;;  %v1618_v50 = vpop.xlane.xlu1 %1617  ;;  %v1786_v52 = vadd.f32 %v4066_v43, %v1772_v46 }
 0x369   : > { %v1759_v56 = vmul.f32 %v3217_v48, %v4004_v10  ;;  %3226 = vrsqrt.f32 %v1748_v44  ;;  %v1622_v53 = vmul.f32 0.125, %v1618_v50  ;;  %v1785_v57 = vadd.f32 %v4066_v43, %v1771_v63  ;;  %v2867_v10 = vld [vmem:[%s4365_s21] ss:$0 sm:$0xff]  ;;  %s3505_s21 = smov 24  }
 0x36a   : > { %v1774_v58 = vmul.f32 %v4059_v21, %v1760_v49  ;;  %3228 = vrsqrt.f32 %v1625_v47  ;;  %v1651_v54 = vadd.f32 %v2867_v10, %v1641_v60 }
 0x36b   : > { %v3219_v62 = vpop.eup %3218  ;;  %v1773_v61 = vmul.f32 %v4059_v21, %v1759_v56  ;;  %v1626_v2 = vadd.f32 1e-05, %v1622_v53  ;;  %v3064_v3 = vpack.c.bf16 %v1786_v52, %v1785_v57  ;;  %v2853_v57 = vld [vmem:[%s4366_s22] ss:$0 sm:$0xff]  ;;  %s4369_s22 = sld [smem:[#allocation27_spill]] }
 0x36c   : > { %v3221_v4 = vpop.eup %3220  ;;  %v1632_v5 = vmul.f32 %v3219_v62, %v4002_v7  ;;  %v1788_v6 = vadd.f32 %v4066_v43, %v1774_v58  ;;  %v1655_v18 = vmul.f32 0.35355338, %v1651_v54 }
 0x36d   : > { %v1762_v8 = vmul.f32 %v3221_v4, %v4017_v20  ;;  %3230 = vrsqrt.f32 %v1626_v2  ;;  %3066 = vmatpush3.bf16.xpose.msk.msra.mxu1 %vm4081_vm3, %v3064_v3  ;;  %v1787_v9 = vadd.f32 %v4066_v43, %v1773_v61 }
 0x36e   : > { %v1642_v15 = vmul.f32 %v2866_v55, %v1632_v5  ;;  %3071 = vmatprep.subr.bf16.mxu1 %v3495_v0 }
 0x36f   : > { %v3223_v11 = vpop.eup %3222  ;;  %v3068_v12 = vpack.c.bf16 %v1788_v6, %v1787_v9  ;;  %v1776_v14 = vmul.f32 %v4059_v21, %v1762_v8 }
 0x370   : > { %v3225_v13 = vpop.eup %3224  ;;  %v1761_v7 = vmul.f32 %v3223_v11, %v4013_v17  ;;  %v1652_v19 = vadd.f32 %v2867_v10, %v1642_v15 }
 0x371   : > { %v1763_v16 = vmul.f32 %v3225_v13, %v4029_v32  ;;  %3070 = vmatpush3.bf16.xpose.msk.msra.mxu0 %vm4081_vm3, %v3068_v12  ;;  %v1790_v32 = vadd.f32 %v4066_v43, %v1776_v14 }
 0x372   : > { %v1775_v20 = vmul.f32 %v4059_v21, %v1761_v7  ;;  %3075 = vmatprep.subr.bf16.mxu0 %v3495_v0  ;;  %v1656_v29 = vmul.f32 0.35355338, %v1652_v19 }
 0x373   : > { %v3227_v22 = vpop.eup %3226  ;;  %v1777_v24 = vmul.f32 %v4059_v21, %v1763_v16 }
 0x374   : > { %v3229_v23 = vpop.eup %3228  ;;  %v1764_v26 = vmul.f32 %v3227_v22, %v4027_v30  ;;  %2979 = vmatmul.mubr.msk.f32.vlgmr.msra.gmra.mrb[2].mxu1 %vm1581_vm2, %v1655_v18  ;;  %v1789_v17 = vadd.f32 %v4066_v43, %v1775_v20 }
 0x375   : > { %v1633_v27 = vmul.f32 %v3229_v23, %v4039_v33  ;;  %2992 = vmatprep.mubr.msk.f32.mxu1 %vm3496_vm0, %v3497_v1  ;;  %v1791_v30 = vadd.f32 %v4066_v43, %v1777_v24 }
 0x376   : > { %v1778_v28 = vmul.f32 %v4059_v21, %v1764_v26  ;;  %v3072_v31 = vpack.c.bf16 %v1790_v32, %v1789_v17 }
 0x377   : > { %v3231_v34 = vpop.eup %3230  ;;  %v1643_v35 = vmul.f32 %v2866_v55, %v1633_v27 }
 0x378   : > { %v1634_v36 = vmul.f32 %v3231_v34, %v4036_v40  ;;  %2986 = vmatmul.mubr.msk.f32.vlgmr.msra.gmra.mrb[4].mxu0 %vm1581_vm2, %v1656_v29  ;;  %3074 = vmatpush3.bf16.xpose.msk.msra.mxu1 %vm4081_vm3, %v3072_v31  ;;  %v1792_v33 = vadd.f32 %v4066_v43, %v1778_v28 }
 0x379   : > { %v1653_v38 = vadd.f32 %v2867_v10, %v1643_v35  ;;  %2999 = vmatprep.mubr.msk.f32.mxu0 %vm3496_vm0, %v3497_v1  ;;  %3079 = vmatprep.subr.bf16.mxu1 %v3495_v0 }
 0x37a   : > { %v3076_v21 = vpack.c.bf16 %v1792_v33, %v1791_v30  ;;  %v1644_v39 = vmul.f32 %v2866_v55, %v1634_v36 }
 0x37b   : > { %v1657_v40 = vmul.f32 0.35355338, %v1653_v38 }
 0x37c   : > { %3078 = vmatpush3.bf16.xpose.msk.msra.mxu0 %vm4081_vm3, %v3076_v21  ;;  %v1654_v41 = vadd.f32 %v2867_v10, %v1644_v39 }
 0x37d   : > { %3091 = vmatprep.subr.bf16.mxu0 %v3495_v0 }
 0x37e   : > { %v1658_v42 = vmul.f32 0.35355338, %v1654_v41 }
 0x37f   : > { %2993 = vmatmul.mubr.msk.f32.vlgmr.msra.gmra.mrb[4].mxu1 %vm1581_vm2, %v1657_v40 }
 0x380   : > { %3006 = vmatprep.mubr.msk.f32.mxu1 %vm3496_vm0, %v3497_v1 }
 0x383   : > { %3000 = vmatmul.mubr.msk.f32.vlgmr.msra.gmra.mrb[6].mxu0 %vm1581_vm2, %v1658_v42 }
 0x384   : > { %3038 = vmatprep.mubr.msk.f32.mxu0 %vm3496_vm0, %v3497_v1 }
 0x399   : > { %v2973_v43 = vpop.f32.mrb[2].mxu0 }
 0x39a   : > { %v840_v45 = vpop.f32.mrb[3].mxu0  ;;  %v4137_v59 = vadd.f32 %v2973_v43, %v2853_v57 }
 0x39b   : > { %v841_v58 = vadd.f32 %v2853_v57, %v840_v45 }
 0x447   : > { %v1868_v46 = vpop.f32.mrb[2].mxu1 }
 0x448   : > { %v2980_v25 = vpop.f32.mrb[3].mxu1  ;;  %v2110_v63 = vsel %vm2109_vm4, %v1868_v46, -inf }
 0x449   : > { %2111 = vmax.xlane.f32.xlu0 %v2110_v63 }
 0x44b   : > { %v1947_v44 = vpop.f32.mrb[4].mxu0 }
 0x44c   : > { %v2987_v47 = vpop.f32.mrb[5].mxu0  ;;  %v2113_v55 = vsel %vm2109_vm4, %v1947_v44, -inf }
 0x44d   : > { %2114 = vmax.xlane.f32.xlu1 %v2113_v55 }
 0x452   : > { %v2026_v48 = vpop.f32.mrb[4].mxu1 }
 0x453   : > { %v2994_v49 = vpop.f32.mrb[5].mxu1  ;;  %v2116_v50 = vsel %vm2109_vm4, %v2026_v48, -inf }
 0x454   : > { %2117 = vmax.xlane.f32.xlu0 %v2116_v50 }
 0x456   : > { %v2105_v52 = vpop.f32.mrb[6].mxu0 }
 0x457   : > { %v3001_v56 = vpop.f32.mrb[7].mxu0  ;;  %v2119_v53 = vsel %vm2109_vm4, %v2105_v52, -inf }
 0x458   : > { %2120 = vmax.xlane.f32.xlu1 %v2119_v53 }
 0x469   : > { %1289 = vrot.lane.b32.xlu1 %v841_v58, %s3499_s27 }
 0x46a   : > { %1291 = vrot.lane.b32.xlu0 %v4137_v59, %s3499_s27  ;;  %s582_s27 = scalar_lea.vmem [#allocation11], %s2842_s13  ;;  %s3506_s13 = smov [#allocation11]  }
 0x46b   : > { %s2698_s2 = sshll.u32 %s582_s27, 4  ;;  %s4258_s2 = int_to_ptr.vmem [resolvable:$true] %s2698_s2 }
 0x46d   : > { %1295 = vrot.lane.b32.xlu1 %v841_v58, %s3498_s12 }
 0x46e   : > { %1301 = vrot.lane.b32.xlu0 %v841_v58, %s3500_s11 }
 0x471   : > { %1297 = vrot.lane.b32.xlu1 %v4137_v59, %s3498_s12  ;;  %s2891_s12 = sshll.u32 %s4368_s16, 7  ;;  %s3392_s16 = scalar_lea.vmem %s4258_s2, 128 }
 0x472   : > { %s4256_s0 = scalar_lea.hbm %s4370_s7, %s2891_s12  ;;  %p3393_p4 = scmp.ne.s32.totalorder %s4258_s2, %s3392_s16 }
 0x474   : > { %p3394_p8 = pnand %p3393_p4, %p3738_p10 }
 0x475   : > { %1303 = vrot.lane.b32.xlu1 %v4137_v59, %s3500_s11  ;;  %s4367_s11 = sld [smem:[#allocation26_spill]] }
 0x476   : > { %p3395_p1 = pneg %p3394_p8 }
 0x4d6   : > { %v2112_v60 = vpop.xlane.xlu0 %2111 }
 0x4d7   : > { %v2122_v62 = vsub.f32 %v1868_v46, %v2112_v60 }
 0x4d9   : > { %v2126_v61 = vmul.f32 1.442695, %v2122_v62 }
 0x4da   : > { %v2115_v2 = vpop.xlane.xlu1 %2114 }
 0x4db   : > { %3232 = vpow2.f32 %v2126_v61  ;;  %v2123_v3 = vsub.f32 %v1947_v44, %v2115_v2 }
 0x4dd   : > { %v2128_v10 = vmul.f32 1.442695, %v2123_v3 }
 0x4df   : > { %3234 = vpow2.f32 %v2128_v10 }
 0x4e1   : > { %v2118_v4 = vpop.xlane.xlu0 %2117 }
 0x4e2   : > { %v2124_v5 = vsub.f32 %v2026_v48, %v2118_v4 }
 0x4e4   : > { %v2130_v6 = vmul.f32 1.442695, %v2124_v5 }
 0x4e5   : > { %v4148_v8 = vpop.eup %3232  ;;  %v1292_v9 = vpop.permute.xlu0 %1291 }
 0x4e6   : > { %v2121_v54 = vpop.xlane.xlu1 %2120  ;;  %3236 = vpow2.f32 %v2130_v6  ;;  %v2134_v11 = vsel %vm2109_vm4, %v4148_v8, 0.0 }
 0x4e7   : > { %v2125_v15 = vsub.f32 %v2105_v52, %v2121_v54  ;;  %2135 = vadd.xlane.f32.xlu0 %v2134_v11 }
 0x4e9   : > { %v2132_v12 = vmul.f32 1.442695, %v2125_v15  ;;  %v4152_v13 = vpop.eup %3234  ;;  %v1302_v14 = vpop.permute.xlu0 %1301 }
 0x4ea   : > { %v1290_v7 = vpop.permute.xlu1 %1289  ;;  %v2137_v16 = vsel %vm2109_vm4, %v4152_v13, 0.0 }
 0x4eb   : > { %3238 = vpow2.f32 %v2132_v12  ;;  %2138 = vadd.xlane.f32.xlu0 %v2137_v16  ;;  %v1323_v20 = vcombine.low %v1290_v7, %v1302_v14  ;;  %v1324_v18 = vcombine.high %v1290_v7, %v1302_v14 }
 0x4ed   : > { %v1331_v26 = vrot.slane %v1323_v20, %v3905_v37  ;;  %v1338_v17 = vrot.slane %v1324_v18, %v3905_v37 }
 0x4ee   : > { %v1296_v19 = vpop.permute.xlu1 %1295 }
 0x4ef   : > { %v1307_v22 = vcombine.low %v841_v58, %v1296_v19  ;;  %v1308_v23 = vcombine.high %v841_v58, %v1296_v19 }
 0x4f0   : > { %v4156_v24 = vpop.eup %3236 }
 0x4f1   : > { %v1315_v32 = vrot.slane %v1307_v22, %v3905_v37  ;;  %v1322_v27 = vrot.slane %v1308_v23, %v3905_v37  ;;  %v2140_v29 = vsel %vm2109_vm4, %v4156_v24, 0.0 }
 0x4f2   : > { %v1298_v28 = vpop.permute.xlu1 %1297  ;;  %2141 = vadd.xlane.f32.xlu1 %v2140_v29 }
 0x4f3   : > { %v1339_v31 = vcombine.low %v1315_v32, %v1331_v26  ;;  %v1340_v34 = vcombine.high %v1315_v32, %v1331_v26  ;;  %v1355_v35 = vcombine.low %v1322_v27, %v1338_v17  ;;  %v1356_v36 = vcombine.high %v1322_v27, %v1338_v17 }
 0x4f4   : > { %v1375_v40 = vcombine.low %v4137_v59, %v1298_v28  ;;  %v1376_v41 = vcombine.high %v4137_v59, %v1298_v28 }
 0x4f5   : > { %v4164_v30 = vpop.eup %3238  ;;  %v1347_v33 = vrot.slane %v1339_v31, %v3909_v51  ;;  %v1354_v38 = vrot.slane %v1340_v34, %v3909_v51  ;;  %v1363_v21 = vrot.slane %v1355_v35, %v3909_v51  ;;  %v1370_v39 = vrot.slane %v1356_v36, %v3909_v51 }
 0x4f6   : > { %v1304_v42 = vpop.permute.xlu1 %1303  ;;  %v2143_v43 = vsel %vm2109_vm4, %v4164_v30, 0.0  ;;  %v1383_v52 = vrot.slane %v1375_v40, %v3905_v37  ;;  %v1390_v56 = vrot.slane %v1376_v41, %v3905_v37 }
 0x4f7   : > { %v1443_v45 = vcombine.low %v1347_v33, %v1354_v38  ;;  %v2862_v46 = vcombine.high %v1347_v33, %v1354_v38  ;;  %v1459_v25 = vcombine.low %v1363_v21, %v1370_v39  ;;  %v2863_v63 = vcombine.high %v1363_v21, %v1370_v39  ;;  %2144 = vadd.xlane.f32.xlu0 %v2143_v43 }
 0x4f8   : > { %v1391_v44 = vcombine.low %v1292_v9, %v1304_v42  ;;  %v1392_v47 = vcombine.high %v1292_v9, %v1304_v42 }
 0x4f9   : > { %v1450_v55 = vrot.slane %v1443_v45, %v3905_v37  ;;  %v1458_v48 = vrot.slane %v2862_v46, %v3905_v37  ;;  %v1466_v49 = vrot.slane %v1459_v25, %v3905_v37  ;;  %v1474_v50 = vrot.slane %v2863_v63, %v3905_v37 }
 0x4fa   : > { %v1399_v53 = vrot.slane %v1391_v44, %v3905_v37  ;;  %v1406_v57 = vrot.slane %v1392_v47, %v3905_v37 }
 0x4fb   : > { %v1475_v58 = vcombine.low %v1450_v55, %v1458_v48  ;;  %v1491_v59 = vcombine.low %v1466_v49, %v1474_v50  ;;  %v1476_v60 = vcombine.high %v1450_v55, %v1458_v48  ;;  %v1492_v62 = vcombine.high %v1466_v49, %v1474_v50 }
 0x4fc   : > { %v1407_v61 = vcombine.low %v1383_v52, %v1399_v53  ;;  %v1408_v2 = vcombine.high %v1383_v52, %v1399_v53  ;;  %v1423_v3 = vcombine.low %v1390_v56, %v1406_v57  ;;  %v1424_v10 = vcombine.high %v1390_v56, %v1406_v57  ;;  %v2598_v53 = vld [vmem:[%s4367_s11] sm:$0xff]  ;;  %v2599_v57 = vld [vmem:[%s4367_s11 + $0x8] sm:$0xff] }
 0x4fd   : > { %v1483_v4 = vrot.slane %v1475_v58, %v3909_v51  ;;  %v1499_v5 = vrot.slane %v1491_v59, %v3909_v51  ;;  %v1490_v6 = vrot.slane %v1476_v60, %v3909_v51  ;;  %v1506_v9 = vrot.slane %v1492_v62, %v3909_v51 }
 0x4fe   : > { %v1415_v54 = vrot.slane %v1407_v61, %v3909_v51  ;;  %v1422_v15 = vrot.slane %v1408_v2, %v3909_v51  ;;  %v1431_v11 = vrot.slane %v1423_v3, %v3909_v51  ;;  %v1438_v12 = vrot.slane %v1424_v10, %v3909_v51 }
 0x4ff   : > { %v1508_v14 = vcombine.high %v1483_v4, %v1499_v5  ;;  %v1509_v7 = vcombine.low %v1490_v6, %v1506_v9  ;;  %v1510_v16 = vcombine.high %v1490_v6, %v1506_v9  ;;  %v1507_v38 = vcombine.low %v1483_v4, %v1499_v5 }
 0x500   : > { %v1511_v20 = vcombine.low %v1415_v54, %v1422_v15  ;;  %v2864_v18 = vcombine.high %v1415_v54, %v1422_v15  ;;  %v1527_v19 = vcombine.low %v1431_v11, %v1438_v12  ;;  %v2865_v22 = vcombine.high %v1431_v11, %v1438_v12 }
 0x502   : > { %v1518_v23 = vrot.slane %v1511_v20, %v3905_v37  ;;  %v1526_v26 = vrot.slane %v2864_v18, %v3905_v37  ;;  %v1534_v17 = vrot.slane %v1527_v19, %v3905_v37  ;;  %v1542_v32 = vrot.slane %v2865_v22, %v3905_v37 }
 0x504   : > { %v1543_v27 = vcombine.low %v1518_v23, %v1526_v26  ;;  %v1559_v28 = vcombine.low %v1534_v17, %v1542_v32  ;;  %v1544_v29 = vcombine.high %v1518_v23, %v1526_v26  ;;  %v1560_v31 = vcombine.high %v1534_v17, %v1542_v32 }
 0x506   : > { %v1551_v34 = vrot.slane %v1543_v27, %v3909_v51  ;;  %v1567_v35 = vrot.slane %v1559_v28, %v3909_v51  ;;  %v1558_v36 = vrot.slane %v1544_v29, %v3909_v51  ;;  %v1574_v33 = vrot.slane %v1560_v31, %v3909_v51 }
 0x508   : > { %v1575_v21 = vcombine.low %v1551_v34, %v1567_v35  ;;  %v1576_v39 = vcombine.high %v1551_v34, %v1567_v35  ;;  %v1577_v40 = vcombine.low %v1558_v36, %v1574_v33  ;;  %v1578_v41 = vcombine.high %v1558_v36, %v1574_v33 }
 0x50a   : > { %v3080_v42 = vpack.c.bf16 %v1575_v21, %v1507_v38  ;;  %v3083_v43 = vpack.c.bf16 %v1576_v39, %v1508_v14  ;;  %v3086_v45 = vpack.c.bf16 %v1577_v40, %v1509_v7  ;;  %v3089_v46 = vpack.c.bf16 %v1578_v41, %v1510_v16  ;;  %v2600_v7 = vld [vmem:[%s4367_s11 + $0x10] sm:$0xff]  ;;  %v2601_v16 = vld [vmem:[%s4367_s11 + $0x18] sm:$0xff] }
 0x50b   : > { %v3095_v23 = vpack.c.bf16 %v2601_v16, %v2600_v7 }
 0x50c   : > { %3081 = vmatpush3.bf16.msra.mxu1 %v3080_v42 }
 0x50d   : > { %3082 = vmatprep.subr.bf16.mxu1 %v3495_v0 }
 0x574   : > { %v2136_v25 = vpop.xlane.xlu0 %2135 }
 0x575   : > { %3240 = vrcp.f32 %v2136_v25 }
 0x578   : > { %v2139_v63 = vpop.xlane.xlu0 %2138 }
 0x579   : > { %3242 = vrcp.f32 %v2139_v63 }
 0x57f   : > { %v3241_v44 = vpop.eup %3240  ;;  %v2142_v47 = vpop.xlane.xlu1 %2141 }
 0x580   : > { %v2150_v55 = vmul.f32 %v3241_v44, %v4148_v8  ;;  %3244 = vrcp.f32 %v2142_v47 }
 0x582   : > { %3007 = vmatmul.mubr.msk.f32.vlgmr.msra.gmra.mrb[6].mxu1 %vm2109_vm4, %v2150_v55  ;;  %v2888_v55 = vld [vmem:[%s4369_s22] ss:$0 sm:$0xff] }
 0x583   : > { %v3243_v48 = vpop.eup %3242  ;;  %3084 = vmatpush3.bf16.msra.mxu1 %v3083_v43  ;;  %3013 = vmatprep.mubr.msk.f32.mxu1 %vm3496_vm0, %v3497_v1 }
 0x584   : > { %v2145_v49 = vpop.xlane.xlu0 %2144  ;;  %v2151_v50 = vmul.f32 %v3243_v48, %v4152_v13  ;;  %3085 = vmatprep.subr.bf16.mxu1 %v3495_v0 }
 0x585   : > { %3246 = vrcp.f32 %v2145_v49 }
 0x586   : > { %3014 = vmatmul.mubr.msk.f32.vlgmr.msra.gmra.mrb[8].mxu1 %vm2109_vm4, %v2151_v50 }
 0x587   : > { %3087 = vmatpush3.bf16.msra.mxu1 %v3086_v45  ;;  %3020 = vmatprep.mubr.msk.f32.mxu1 %vm3496_vm0, %v3497_v1 }
 0x588   : > { %3088 = vmatprep.subr.bf16.mxu1 %v3495_v0 }
 0x58a   : > { %v3245_v8 = vpop.eup %3244 }
 0x58b   : > { %v2152_v52 = vmul.f32 %v3245_v8, %v4156_v24  ;;  %v3092_v24 = vpack.c.bf16 %v2599_v57, %v2598_v53 }
 0x58d   : > { %3021 = vmatmul.mubr.msk.f32.vlgmr.msra.gmra.mrb[10].mxu1 %vm2109_vm4, %v2152_v52  ;;  %3093 = vmatpush3.bf16.msra.mxu0 %v3092_v24 }
 0x58e   : > { %3090 = vmatpush3.bf16.msra.mxu1 %v3089_v46  ;;  %3027 = vmatprep.mubr.msk.f32.mxu1 %vm3496_vm0, %v3497_v1 }
 0x58f   : > { %v3247_v56 = vpop.eup %3246  ;;  %3094 = vmatprep.subr.bf16.mxu0 %v3495_v0 }
 0x590   : > { %v2153_v13 = vmul.f32 %v3247_v56, %v4164_v30 }
 0x591   : > { %3096 = vmatpush3.bf16.msra.mxu0 %v3095_v23 }
 0x592   : > { %3028 = vmatmul.mubr.msk.f32.vlgmr.msra.gmra.mrb[12].mxu1 %vm2109_vm4, %v2153_v13 }
 0x655   : > { %v2223_v58 = vpop.f32.mrb[6].mxu1 }
 0x656   : > { %v3008_v59 = vpop.f32.mrb[7].mxu1 }
 0x659   : > { %v2296_v60 = vpop.f32.mrb[8].mxu1 }
 0x65a   : > { %v3015_v1 = vpop.f32.mrb[9].mxu1 }
 0x660   : > { %v2369_v62 = vpop.f32.mrb[10].mxu1 }
 0x661   : > { %v2446_v30 = vcombine.low %v2223_v58, %v2369_v62  ;;  %v2447_v61 = vcombine.high %v2223_v58, %v2369_v62  ;;  %v3022_v2 = vpop.f32.mrb[11].mxu1 }
 0x663   : > { %v2454_v6 = vrot.slane %v2446_v30, %v3905_v37  ;;  %v2461_v9 = vrot.slane %v2447_v61, %v3905_v37 }
 0x665   : > { %v2442_v3 = vpop.f32.mrb[12].mxu1 }
 0x666   : > { %v2462_v10 = vcombine.low %v2296_v60, %v2442_v3  ;;  %v2463_v4 = vcombine.high %v2296_v60, %v2442_v3  ;;  %v3029_v5 = vpop.f32.mrb[13].mxu1 }
 0x668   : > { %v2470_v54 = vrot.slane %v2462_v10, %v3905_v37  ;;  %v2477_v0 = vrot.slane %v2463_v4, %v3905_v37 }
 0x66a   : > { %v2478_v15 = vcombine.low %v2454_v6, %v2470_v54  ;;  %v2479_v11 = vcombine.high %v2454_v6, %v2470_v54  ;;  %v2494_v12 = vcombine.low %v2461_v9, %v2477_v0  ;;  %v2495_v14 = vcombine.high %v2461_v9, %v2477_v0 }
 0x66c   : > { %v2486_v20 = vrot.slane %v2478_v15, %v3909_v51  ;;  %v2493_v18 = vrot.slane %v2479_v11, %v3909_v51  ;;  %v2502_v19 = vrot.slane %v2494_v12, %v3909_v51  ;;  %v2509_v22 = vrot.slane %v2495_v14, %v3909_v51 }
 0x66e   : > { %v2514_v26 = vcombine.low %v2486_v20, %v2493_v18  ;;  %v2886_v17 = vcombine.high %v2486_v20, %v2493_v18  ;;  %v2530_v32 = vcombine.low %v2502_v19, %v2509_v22  ;;  %v2887_v27 = vcombine.high %v2502_v19, %v2509_v22 }
 0x670   : > { %v2521_v28 = vrot.slane %v2514_v26, %v3905_v37  ;;  %v2529_v29 = vrot.slane %v2886_v17, %v3905_v37  ;;  %v2537_v31 = vrot.slane %v2530_v32, %v3905_v37  ;;  %v2545_v34 = vrot.slane %v2887_v27, %v3905_v37 }
 0x672   : > { %v2547_v35 = vcombine.high %v2521_v28, %v2529_v29  ;;  %v2563_v36 = vcombine.high %v2537_v31, %v2545_v34  ;;  %v2546_v33 = vcombine.low %v2521_v28, %v2529_v29  ;;  %v2562_v38 = vcombine.low %v2537_v31, %v2545_v34 }
 0x674   : > { %v2561_v21 = vrot.slane %v2547_v35, %v3909_v51  ;;  %v2577_v39 = vrot.slane %v2563_v36, %v3909_v51  ;;  %v2554_v40 = vrot.slane %v2546_v33, %v3909_v51  ;;  %v2570_v41 = vrot.slane %v2562_v38, %v3909_v51 }
 0x676   : > { %v2580_v42 = vcombine.low %v2561_v21, %v2577_v39  ;;  %v2579_v43 = vcombine.high %v2554_v40, %v2570_v41  ;;  %v2581_v45 = vcombine.high %v2561_v21, %v2577_v39  ;;  %v2578_v46 = vcombine.low %v2554_v40, %v2570_v41 }
 0x678   : > { %2587 = vrot.lane.b32.xlu1 %v2580_v42, %s3503_s29  ;;  %2583 = vrot.lane.b32.xlu0 %v2579_v43, %s3504_s19  ;;  %s3396_s29 = sshll.u32 %s3506_s13, 4  ;;  %s3397_s29 = int_to_ptr.vmem [resolvable:$false] %s3396_s29 }
 0x679   : > { %s3398_s19 = scalar_lea.vmem %s3397_s29, 256  ;;  %p3399_p13 = scmp.lt.s32.totalorder %s4258_s2, %s3397_s29 }
 0x67a   : > { %p3400_p3 = scmp.lt.s32.totalorder %s3398_s19, %s3392_s16 }
 0x67c   : > { %2591 = vrot.lane.b32.xlu1 %v2581_v45, %s3505_s21  ;;  %p3401_p5 = por %p3400_p3, %p3399_p13 }
 0x67e   : > { %p3402_p11 = pnand %p3401_p5, %p3395_p1 }
 0x6ea   : > { %v2588_v37 = vpop.permute.xlu1 %2587  ;;  %v2584_v25 = vpop.permute.xlu0 %2583 }
 0x6eb   : > { %v2594_v63 = vsel %vm1581_vm2, %v2578_v46, %v2584_v25 }
 0x6ec   : > { %v2595_v51 = vsel %vm2109_vm4, %v2594_v63, %v2588_v37 }
 0x6ee   : > { %v2592_v44 = vpop.permute.xlu1 %2591 }
 0x6ef   : > { %v2597_v47 = vsel %vm2596_vm5, %v2595_v51, %v2592_v44 }
 0x6f0   : > { %3039 = vmatmul.mubr.msk.f32.vlgmr.msra.gmra.mrb[8].mxu0 %vm597_vm1, %v2597_v47 }
 0x7c3   : > { %v2678_v48 = vpop.f32.mrb[8].mxu0 }
 0x7c4   : > { %v2679_v49 = vadd.f32 %v2888_v55, %v2678_v48  ;;  %v3040_v50 = vpop.f32.mrb[9].mxu0 }
 0x7c6   : > { %2682 = vst.msk [vmem:[%s582_s27] sm:$0xff] %vm597_vm1, %v2679_v49 }
 0x7c7   : > { %3405 = shalt.err (!%p3402_p11)
}
 0x7c8   : > { %s3406_s9 = scalar_lea.hbm %s4256_s0, 128  ;;  %s3410_s25 = scalar_lea.hbm %s4370_s7, 256 }
 0x7c9   : > { %p3407_p12 = scmp.ne.s32.totalorder %s4256_s0, %s3406_s9  ;;  %p3411_p9 = scmp.lt.u32.totalorder %s4256_s0, %s4370_s7 }
 0x7ca   : > { %p3412_p0 = scmp.lt.u32.totalorder %s3410_s25, %s3406_s9  ;;  %p3414_p4 = scmp.lt.u32.totalorder %s3406_s9, %s4256_s0 }
 0x7cb   : > { %p3408_p6 = pnand %p3407_p12, %p3738_p10 }
 0x7cc   : > { %p3413_p2 = por %p3412_p0, %p3411_p9 }
 0x7cd   : > { %p3409_p7 = pneg %p3408_p6 }
 0x7ce   : > { %p3415_p8 = por %p3414_p4, %p3413_p2 }
 0x7d0   : > { %p3416_p1 = pnand %p3415_p8, %p3409_p7 }
 0x7d2   : > { %3419 = shalt.err (!%p3416_p1)
}
 0x7d3   : > { %3113 = dma.vmem_to_hbm [thread:$0]  (%p3738_p10), %s4258_s2, 128, %s4256_s0, %s2684_s23  }
 0x7d4 PF: > { %s4371_s27 = sld [smem:[#allocation17_spill]]  ;;  %s4372_s20 = sld [smem:[#allocation19_spill]] }
 0x7d5   : > { %p4374_p3 = scmp.ge.s32.totalorder %s3486_s18, 2 }
 0x7da   : > { %s2710_s28 = sand.u32 1, %s4371_s27   ;;  %p4373_p13 = scmp.ne.s32.totalorder %s4372_s20, 0 }
 0x7db   : > { %s2711_s16 = scalar_lea.sflag [#allocation4], %s2710_s28 }
 0x7dc   : > { %p3133_p5 = pnand %p4374_p3, %p4373_p13 }
 0x7de   : > { %3461 = dma.done.wait (!%p3133_p5), %s2711_s16, 128  }
 0x7df   : > { %3463 = vsyncadd (!%p3133_p5), %s2711_s16, 4294967168  ;;  %s34_s18 = sadd.s32 1, %s3486_s18   ;;  %s4375_s29 = smov %s3470_s30 }
 0x7e0   : > { %p31_p11 = scmp.ge.s32.totalorder %s34_s18, 4   ;;  %s4376_s30 = smov %s3474_s15 }
 0x7e1   : > { %s4377_s15 = smov %s3753_s24  ;;  %s4378_s16 = smov %s3482_s17 }
 0x7e2   : > { %s4379_s17 = smov %s4381_s26  ;;  %33 = sbr.rel (!%p31_p11) target bundleno = 19 (0x13), region = 146 }
 0x7e9   :  { %2716 = vsyncpa [#allocation3], 1 }
 0x7ea   :  { %2718 = vsyncpa [#allocation3 + $0x1], 1 }
 0x7eb   :  { %2719 = vsyncpa [#allocation6], 1 }
 0x7ec   :  { %2721 = vsyncpa [#allocation6 + $0x1], 1 }
 0x7ed   :  { %2722 = vsyncpa [#allocation9], 1 }
 0x7ee   :  { %2723 = vsyncpa [#allocation4], 1 }
 0x7ef   :  { %2725 = vsyncpa [#allocation4 + $0x1], 1 }

</bundles_post_ra>
